<compile_context>
chip_gen: v5e
topology: v5e:2x2
jax: 0.10.0
libtpu: 0.0.40
codegen_flags: <defaults>
</compile_context>

<pallas_src>
import jax
import jax.numpy as jnp
from jax import lax
from jax.experimental import pallas as pl
from jax.experimental.pallas import tpu as pltpu


# ----------------------------- Pallas kernel ------------------------------ #
def _make_spdconv_kernel(wb, tn):
    """wb: padded band width (multiple of 8); tn: output-channel lane tile (<=256)."""

    def spdconv_kernel(main_ref, halo_ref, w_ref, bias_ref, o_ref, band_ref):
        # main_ref: (1, tr*wb, Cin) bf16   rows [i*tr, (i+1)*tr) of the padded image
        # halo_ref: (1, 8*wb,  Cin) bf16   rows [(i+1)*tr, (i+1)*tr+8)
        # w_ref:    (9, Cin, Np)    bf16   conv taps, BN scale pre-folded
        # bias_ref: (1, Np)         f32    folded BN bias
        # o_ref:    (1, tr*wb, Np)  bf16
        # band_ref: (tr*wb + 3*wb, Cin) bf16 scratch (contiguous flat band)
        m = main_ref.shape[1]                     # tr * wb
        npad = w_ref.shape[-1]

        # Assemble the contiguous band in VMEM (8-aligned, layout no-op copies).
        band_ref[0:m, :] = main_ref[0]
        band_ref[m:m + 3 * wb, :] = halo_ref[0, 0:3 * wb, :]

        # 3x3 conv == 9 shifted 1x1 convs, each a contiguous slice of the flat band.
        # N processed in <=256-wide tiles so the f32 acc slab stays small & hot.
        for c0 in range(0, npad, tn):
            acc = jnp.zeros((m, tn), jnp.float32)
            for ki in range(3):
                for kj in range(3):
                    s = ki * wb + kj              # static offset, contiguous slice
                    patch = band_ref[s:s + m, :]
                    acc = acc + jnp.dot(patch, w_ref[ki * 3 + kj, :, c0:c0 + tn],
                                        preferred_element_type=jnp.float32)
            y = acc + bias_ref[0, c0:c0 + tn]     # f32 (BN scale already in weights)
            yb = y.astype(jnp.bfloat16)           # bf16 SiLU epilogue
            o_ref[0, :, c0:c0 + tn] = yb * jax.nn.sigmoid(yb)

    return spdconv_kernel


# ------------------------------ JAX wrapper -------------------------------- #
def spdconv_forward(x_nchw, conv_w, bn_gamma, bn_beta, bn_mean, bn_var, eps=1e-5):
    """x_nchw: (B, c1, H, W); conv_w: (c2, 4*c1, 3, 3). Returns (B, c2, H/2, W/2)."""
    B, c1, H, W = x_nchw.shape
    assert H % 2 == 0 and W % 2 == 0, "SPDConv expects even spatial dims"
    c2, cin_w, kh, kw = conv_w.shape
    Cin = 4 * c1
    assert cin_w == Cin and kh == 3 and kw == 3
    Ho, Wo = H // 2, W // 2

    # --- space-to-depth + NCHW -> NHWC (torch channel order: group = 2*wi + hi) ---
    x = jnp.transpose(x_nchw, (0, 2, 3, 1))            # (B, H, W, c1)
    x = x.reshape(B, Ho, 2, Wo, 2, c1)                 # (b, ho, hi, wo, wi, c)
    x = jnp.transpose(x, (0, 1, 3, 4, 2, 5))           # (b, ho, wo, wi, hi, c)
    x = x.reshape(B, Ho, Wo, Cin).astype(jnp.bfloat16)

    # --- fold BN (running stats) into weight scale + a single bias ---
    scale = bn_gamma / jnp.sqrt(bn_var + eps)          # (c2,)
    bias = bn_beta - bn_mean * scale                   # (c2,)
    Np = 128 if c2 <= 128 else ((c2 + 255) // 256) * 256   # 256-aligned for big c2
    TN = min(Np, 256)
    w = jnp.transpose(conv_w, (2, 3, 1, 0)) * scale    # (3, 3, Cin, c2)
    w = jnp.pad(w, ((0, 0), (0, 0), (0, 0), (0, Np - c2)))
    w = w.reshape(9, Cin, Np).astype(jnp.bfloat16)
    bias_p = jnp.pad(bias, (0, Np - c2)).reshape(1, Np).astype(jnp.float32)

    # --- tiling: 8-aligned band width and row tile, target M ~= 1024 rows ---
    Wb = ((Wo + 2 + 7) // 8) * 8                       # padded band width
    target_m = 1024
    tr = max(8, min(((target_m // Wb) // 8) * 8, ((Ho + 7) // 8) * 8))
    nb = -(-Ho // tr)
    Ho_pad = nb * tr
    Hp = Ho_pad + 8                                    # 1 top pad row + data + >=7 bottom pad
    M = tr * Wb
    trb = tr // 8                                      # halo block stride (8-row blocks)

    # rows: [0]=top conv pad, [1..Ho]=data, rest zero.  cols: [0]=left pad, [1..Wo]=data.
    x_pad = jnp.pad(x, ((0, 0), (1, Hp - 1 - Ho), (1, Wb - 1 - Wo), (0, 0)))
    x_flat = x_pad.reshape(B, Hp * Wb, Cin)            # free: contiguous merge

    kernel = _make_spdconv_kernel(Wb, TN)

    vmem_need = (2 * M * Cin * 2 + 2 * 8 * Wb * Cin * 2 + 2 * 9 * Cin * Np * 2
                 + 2 * Np * 4 + 2 * M * Np * 2 + (M + 3 * Wb) * Cin * 2
                 + 2 * M * TN * 4)
    vmem_limit = int(min(max(2 * vmem_need, 24 * 1024 * 1024), 48 * 1024 * 1024))

    out = pl.pallas_call(
        kernel,
        out_shape=jax.ShapeDtypeStruct((B, Ho_pad * Wb, Np), jnp.bfloat16),
        grid_spec=pltpu.PrefetchScalarGridSpec(
            num_scalar_prefetch=0,
            grid=(B, nb),
            in_specs=[
                pl.BlockSpec((1, M, Cin), lambda b, i: (b, i, 0)),            # main rows
                pl.BlockSpec((1, 8 * Wb, Cin), lambda b, i: (b, (i + 1) * trb, 0)),  # halo
                pl.BlockSpec((9, Cin, Np), lambda b, i: (0, 0, 0)),           # weights
                pl.BlockSpec((1, Np), lambda b, i: (0, 0)),                   # bias
            ],
            out_specs=pl.BlockSpec((1, M, Np), lambda b, i: (b, i, 0)),
            scratch_shapes=[pltpu.VMEM((M + 3 * Wb, Cin), jnp.bfloat16)],
        ),
        compiler_params=pltpu.CompilerParams(
            dimension_semantics=("parallel", "parallel"),
            vmem_limit_bytes=vmem_limit,
        ),
        cost_estimate=pl.CostEstimate(
            flops=2 * B * nb * M * 9 * Cin * Np,
            transcendentals=B * nb * M * Np,
            bytes_accessed=(x_flat.size * 2 + B * nb * 8 * Wb * Cin * 2
                            + w.size * 2 + bias_p.size * 4
                            + B * Ho_pad * Wb * Np * 2),
        ),
    )(x_flat, x_flat, w, bias_p)

    out = out.reshape(B, Ho_pad, Wb, Np)[:, :Ho, :Wo, :c2].astype(jnp.float32)
    return jnp.transpose(out, (0, 3, 1, 2))            # NCHW, matches the module


# ------------------------------ reference ---------------------------------- #
def space_to_depth_nchw(x):
    # matches torch.cat([x[...,::2,::2], x[...,1::2,::2], x[...,::2,1::2], x[...,1::2,1::2]], 1)
    return jnp.concatenate(
        [x[:, :, ::2, ::2], x[:, :, 1::2, ::2], x[:, :, ::2, 1::2], x[:, :, 1::2, 1::2]],
        axis=1)


def spdconv_reference(x, conv_w, bn_gamma, bn_beta, bn_mean, bn_var, eps=1e-5):
    x_sd = space_to_depth_nchw(x)
    scale = bn_gamma / jnp.sqrt(bn_var + eps)
    bias = bn_beta - bn_mean * scale
    w = conv_w * scale[:, None, None, None]
    # emulate the kernel's bf16 operand rounding (both accumulate in f32)
    x_sd = x_sd.astype(jnp.bfloat16).astype(jnp.float32)
    w = w.astype(jnp.bfloat16).astype(jnp.float32)
    y = lax.conv_general_dilated(
        x_sd, w, window_strides=(1, 1), padding=((1, 1), (1, 1)),
        dimension_numbers=("NCHW", "OIHW", "NCHW"))
    y = y + bias.reshape(1, -1, 1, 1)
    return y * jax.nn.sigmoid(y)


# -------------------------------- main -------------------------------------- #
if __name__ == "__main__":
    key = jax.random.PRNGKey(0)
    k_x, k_w, k_g, k_b, k_m, k_v = jax.random.split(key, 6)

    B, c1, H, W = 2, 4, 16, 16
    c2 = 32
    Cin = 4 * c1

    x = jax.random.normal(k_x, (B, c1, H, W), dtype=jnp.float32)
    conv_w = jax.random.normal(k_w, (c2, Cin, 3, 3), dtype=jnp.float32) * 0.1
    bn_gamma = 1.0 + 0.1 * jax.random.normal(k_g, (c2,), dtype=jnp.float32)
    bn_beta = 0.1 * jax.random.normal(k_b, (c2,), dtype=jnp.float32)
    bn_mean = 0.1 * jax.random.normal(k_m, (c2,), dtype=jnp.float32)
    bn_var = jnp.abs(jax.random.normal(k_v, (c2,), dtype=jnp.float32)) + 0.5

    out = jax.jit(spdconv_forward)(x, conv_w, bn_gamma, bn_beta, bn_mean, bn_var)
    out = jax.block_until_ready(out)

    ref = spdconv_reference(x, conv_w, bn_gamma, bn_beta, bn_mean, bn_var)
    assert out.shape == (B, c2, H // 2, W // 2), out.shape
    max_err = float(jnp.max(jnp.abs(out - ref)))
    assert jnp.allclose(out, ref, atol=2e-2, rtol=2e-2), \
        f"mismatch vs reference (max abs err {max_err})"

    print("KERNEL_OK")
</pallas_src>

<mosaic_0001>
module attributes {stable_mosaic.version = 11 : i64} {
  func.func @spdconv_kernel(%arg0: i32, %arg1: i32, %arg2: memref<1x128x16xbf16, #tpu.memory_space<vmem>>, %arg3: memref<1x128x16xbf16, #tpu.memory_space<vmem>>, %arg4: memref<9x16x128xbf16, #tpu.memory_space<vmem>>, %arg5: memref<1x128xf32, #tpu.memory_space<vmem>>, %arg6: memref<1x128x128xbf16, #tpu.memory_space<vmem>>, %arg7: memref<176x16xbf16, #tpu.memory_space<vmem>>) attributes {dimension_semantics = [#tpu.dimension_semantics<parallel>, #tpu.dimension_semantics<parallel>], iteration_bounds = array<i64: 2, 1>, scalar_prefetch = 0 : i64, scratch_operands = 1 : i64, tpu.core_type = #tpu.core_type<tc>, window_params = [{transform_indices = @transform_0, window_bounds = array<i64: 1, 128, 16>}, {transform_indices = @transform_1, window_bounds = array<i64: 1, 128, 16>}, {pipeline_mode = #tpu.pipeline_mode<synchronous>, transform_indices = @transform_2, window_bounds = array<i64: 9, 16, 128>}, {pipeline_mode = #tpu.pipeline_mode<synchronous>, transform_indices = @transform_3, window_bounds = array<i64: 1, 128>}, {transform_indices = @transform_4, window_bounds = array<i64: 1, 128, 128>}]} {
    %c0 = arith.constant 0 : index
    %c0_0 = arith.constant 0 : index
    %c0_1 = arith.constant 0 : index
    %0 = vector.load %arg2[%c0, %c0_0, %c0_1] : memref<1x128x16xbf16, #tpu.memory_space<vmem>>, vector<1x128x16xbf16>
    %1 = vector.shape_cast %0 : vector<1x128x16xbf16> to vector<128x16xbf16>
    %c0_2 = arith.constant 0 : index
    %c0_3 = arith.constant 0 : index
    %2 = vector.load %arg7[%c0_2, %c0_3] : memref<176x16xbf16, #tpu.memory_space<vmem>>, vector<128x16xbf16>
    tpu.vector_store %arg7[%c0_2, %c0_3], %1 {strides = array<i32>} : memref<176x16xbf16, #tpu.memory_space<vmem>>, vector<128x16xbf16>,
    %c0_4 = arith.constant 0 : index
    %c0_5 = arith.constant 0 : index
    %c0_6 = arith.constant 0 : index
    %3 = vector.load %arg3[%c0_4, %c0_5, %c0_6] : memref<1x128x16xbf16, #tpu.memory_space<vmem>>, vector<1x48x16xbf16>
    %4 = vector.shape_cast %3 : vector<1x48x16xbf16> to vector<48x16xbf16>
    %c128 = arith.constant 128 : index
    %c0_7 = arith.constant 0 : index
    %5 = vector.load %arg7[%c128, %c0_7] : memref<176x16xbf16, #tpu.memory_space<vmem>>, vector<48x16xbf16>
    tpu.vector_store %arg7[%c128, %c0_7], %4 {strides = array<i32>} : memref<176x16xbf16, #tpu.memory_space<vmem>>, vector<48x16xbf16>,
    %cst = arith.constant 0.000000e+00 : f32
    %6 = vector.broadcast %cst : f32 to vector<128x128xf32>
    %c0_8 = arith.constant 0 : index
    %c0_9 = arith.constant 0 : index
    %7 = vector.load %arg7[%c0_8, %c0_9] : memref<176x16xbf16, #tpu.memory_space<vmem>>, vector<128x16xbf16>
    %c0_10 = arith.constant 0 : index
    %c0_11 = arith.constant 0 : index
    %c0_12 = arith.constant 0 : index
    %8 = vector.load %arg4[%c0_10, %c0_11, %c0_12] : memref<9x16x128xbf16, #tpu.memory_space<vmem>>, vector<1x16x128xbf16>
    %9 = vector.shape_cast %8 : vector<1x16x128xbf16> to vector<16x128xbf16>
    %cst_13 = arith.constant dense<0.000000e+00> : vector<128x128xf32>
    %10 = tpu.matmul %7, %9, %cst_13 {dimension_numbers = #tpu.dot_dimension_numbers<[1], [0], [0], [1], [0, 0, 1, 1], [], []>} : vector<128x16xbf16>, vector<16x128xbf16>, vector<128x128xf32> -> vector<128x128xf32>
    %11 = arith.addf %6, %10 : vector<128x128xf32>
    %c1 = arith.constant 1 : index
    %c0_14 = arith.constant 0 : index
    %12 = vector.load %arg7[%c1, %c0_14] : memref<176x16xbf16, #tpu.memory_space<vmem>>, vector<128x16xbf16>
    %c1_15 = arith.constant 1 : index
    %c0_16 = arith.constant 0 : index
    %c0_17 = arith.constant 0 : index
    %13 = vector.load %arg4[%c1_15, %c0_16, %c0_17] : memref<9x16x128xbf16, #tpu.memory_space<vmem>>, vector<1x16x128xbf16>
    %14 = vector.shape_cast %13 : vector<1x16x128xbf16> to vector<16x128xbf16>
    %cst_18 = arith.constant dense<0.000000e+00> : vector<128x128xf32>
    %15 = tpu.matmul %12, %14, %cst_18 {dimension_numbers = #tpu.dot_dimension_numbers<[1], [0], [0], [1], [0, 0, 1, 1], [], []>} : vector<128x16xbf16>, vector<16x128xbf16>, vector<128x128xf32> -> vector<128x128xf32>
    %16 = arith.addf %11, %15 : vector<128x128xf32>
    %c2 = arith.constant 2 : index
    %c0_19 = arith.constant 0 : index
    %17 = vector.load %arg7[%c2, %c0_19] : memref<176x16xbf16, #tpu.memory_space<vmem>>, vector<128x16xbf16>
    %c2_20 = arith.constant 2 : index
    %c0_21 = arith.constant 0 : index
    %c0_22 = arith.constant 0 : index
    %18 = vector.load %arg4[%c2_20, %c0_21, %c0_22] : memref<9x16x128xbf16, #tpu.memory_space<vmem>>, vector<1x16x128xbf16>
    %19 = vector.shape_cast %18 : vector<1x16x128xbf16> to vector<16x128xbf16>
    %cst_23 = arith.constant dense<0.000000e+00> : vector<128x128xf32>
    %20 = tpu.matmul %17, %19, %cst_23 {dimension_numbers = #tpu.dot_dimension_numbers<[1], [0], [0], [1], [0, 0, 1, 1], [], []>} : vector<128x16xbf16>, vector<16x128xbf16>, vector<128x128xf32> -> vector<128x128xf32>
    %21 = arith.addf %16, %20 : vector<128x128xf32>
    %c16 = arith.constant 16 : index
    %c0_24 = arith.constant 0 : index
    %22 = vector.load %arg7[%c16, %c0_24] : memref<176x16xbf16, #tpu.memory_space<vmem>>, vector<128x16xbf16>
    %c3 = arith.constant 3 : index
    %c0_25 = arith.constant 0 : index
    %c0_26 = arith.constant 0 : index
    %23 = vector.load %arg4[%c3, %c0_25, %c0_26] : memref<9x16x128xbf16, #tpu.memory_space<vmem>>, vector<1x16x128xbf16>
    %24 = vector.shape_cast %23 : vector<1x16x128xbf16> to vector<16x128xbf16>
    %cst_27 = arith.constant dense<0.000000e+00> : vector<128x128xf32>
    %25 = tpu.matmul %22, %24, %cst_27 {dimension_numbers = #tpu.dot_dimension_numbers<[1], [0], [0], [1], [0, 0, 1, 1], [], []>} : vector<128x16xbf16>, vector<16x128xbf16>, vector<128x128xf32> -> vector<128x128xf32>
    %26 = arith.addf %21, %25 : vector<128x128xf32>
    %c17 = arith.constant 17 : index
    %c0_28 = arith.constant 0 : index
    %27 = vector.load %arg7[%c17, %c0_28] : memref<176x16xbf16, #tpu.memory_space<vmem>>, vector<128x16xbf16>
    %c4 = arith.constant 4 : index
    %c0_29 = arith.constant 0 : index
    %c0_30 = arith.constant 0 : index
    %28 = vector.load %arg4[%c4, %c0_29, %c0_30] : memref<9x16x128xbf16, #tpu.memory_space<vmem>>, vector<1x16x128xbf16>
    %29 = vector.shape_cast %28 : vector<1x16x128xbf16> to vector<16x128xbf16>
    %cst_31 = arith.constant dense<0.000000e+00> : vector<128x128xf32>
    %30 = tpu.matmul %27, %29, %cst_31 {dimension_numbers = #tpu.dot_dimension_numbers<[1], [0], [0], [1], [0, 0, 1, 1], [], []>} : vector<128x16xbf16>, vector<16x128xbf16>, vector<128x128xf32> -> vector<128x128xf32>
    %31 = arith.addf %26, %30 : vector<128x128xf32>
    %c18 = arith.constant 18 : index
    %c0_32 = arith.constant 0 : index
    %32 = vector.load %arg7[%c18, %c0_32] : memref<176x16xbf16, #tpu.memory_space<vmem>>, vector<128x16xbf16>
    %c5 = arith.constant 5 : index
    %c0_33 = arith.constant 0 : index
    %c0_34 = arith.constant 0 : index
    %33 = vector.load %arg4[%c5, %c0_33, %c0_34] : memref<9x16x128xbf16, #tpu.memory_space<vmem>>, vector<1x16x128xbf16>
    %34 = vector.shape_cast %33 : vector<1x16x128xbf16> to vector<16x128xbf16>
    %cst_35 = arith.constant dense<0.000000e+00> : vector<128x128xf32>
    %35 = tpu.matmul %32, %34, %cst_35 {dimension_numbers = #tpu.dot_dimension_numbers<[1], [0], [0], [1], [0, 0, 1, 1], [], []>} : vector<128x16xbf16>, vector<16x128xbf16>, vector<128x128xf32> -> vector<128x128xf32>
    %36 = arith.addf %31, %35 : vector<128x128xf32>
    %c32 = arith.constant 32 : index
    %c0_36 = arith.constant 0 : index
    %37 = vector.load %arg7[%c32, %c0_36] : memref<176x16xbf16, #tpu.memory_space<vmem>>, vector<128x16xbf16>
    %c6 = arith.constant 6 : index
    %c0_37 = arith.constant 0 : index
    %c0_38 = arith.constant 0 : index
    %38 = vector.load %arg4[%c6, %c0_37, %c0_38] : memref<9x16x128xbf16, #tpu.memory_space<vmem>>, vector<1x16x128xbf16>
    %39 = vector.shape_cast %38 : vector<1x16x128xbf16> to vector<16x128xbf16>
    %cst_39 = arith.constant dense<0.000000e+00> : vector<128x128xf32>
    %40 = tpu.matmul %37, %39, %cst_39 {dimension_numbers = #tpu.dot_dimension_numbers<[1], [0], [0], [1], [0, 0, 1, 1], [], []>} : vector<128x16xbf16>, vector<16x128xbf16>, vector<128x128xf32> -> vector<128x128xf32>
    %41 = arith.addf %36, %40 : vector<128x128xf32>
    %c33 = arith.constant 33 : index
    %c0_40 = arith.constant 0 : index
    %42 = vector.load %arg7[%c33, %c0_40] : memref<176x16xbf16, #tpu.memory_space<vmem>>, vector<128x16xbf16>
    %c7 = arith.constant 7 : index
    %c0_41 = arith.constant 0 : index
    %c0_42 = arith.constant 0 : index
    %43 = vector.load %arg4[%c7, %c0_41, %c0_42] : memref<9x16x128xbf16, #tpu.memory_space<vmem>>, vector<1x16x128xbf16>
    %44 = vector.shape_cast %43 : vector<1x16x128xbf16> to vector<16x128xbf16>
    %cst_43 = arith.constant dense<0.000000e+00> : vector<128x128xf32>
    %45 = tpu.matmul %42, %44, %cst_43 {dimension_numbers = #tpu.dot_dimension_numbers<[1], [0], [0], [1], [0, 0, 1, 1], [], []>} : vector<128x16xbf16>, vector<16x128xbf16>, vector<128x128xf32> -> vector<128x128xf32>
    %46 = arith.addf %41, %45 : vector<128x128xf32>
    %c34 = arith.constant 34 : index
    %c0_44 = arith.constant 0 : index
    %47 = vector.load %arg7[%c34, %c0_44] : memref<176x16xbf16, #tpu.memory_space<vmem>>, vector<128x16xbf16>
    %c8 = arith.constant 8 : index
    %c0_45 = arith.constant 0 : index
    %c0_46 = arith.constant 0 : index
    %48 = vector.load %arg4[%c8, %c0_45, %c0_46] : memref<9x16x128xbf16, #tpu.memory_space<vmem>>, vector<1x16x128xbf16>
    %49 = vector.shape_cast %48 : vector<1x16x128xbf16> to vector<16x128xbf16>
    %cst_47 = arith.constant dense<0.000000e+00> : vector<128x128xf32>
    %50 = tpu.matmul %47, %49, %cst_47 {dimension_numbers = #tpu.dot_dimension_numbers<[1], [0], [0], [1], [0, 0, 1, 1], [], []>} : vector<128x16xbf16>, vector<16x128xbf16>, vector<128x128xf32> -> vector<128x128xf32>
    %51 = arith.addf %46, %50 : vector<128x128xf32>
    %c0_48 = arith.constant 0 : index
    %c0_49 = arith.constant 0 : index
    %52 = vector.load %arg5[%c0_48, %c0_49] : memref<1x128xf32, #tpu.memory_space<vmem>>, vector<1x128xf32>
    %53 = vector.shape_cast %52 : vector<1x128xf32> to vector<128xf32>
    %54 = vector.shape_cast %53 : vector<128xf32> to vector<1x128xf32>
    %55 = vector.broadcast %54 : vector<1x128xf32> to vector<128x128xf32>
    %56 = arith.addf %51, %55 : vector<128x128xf32>
    %57 = arith.truncf %56 : vector<128x128xf32> to vector<128x128xbf16>
    %58 = arith.negf %57 : vector<128x128xbf16>
    %59 = math.exp %58 : vector<128x128xbf16>
    %cst_50 = arith.constant 1.000000e+00 : bf16
    %60 = vector.broadcast %cst_50 : bf16 to vector<128x128xbf16>
    %61 = arith.addf %60, %59 : vector<128x128xbf16>
    %62 = arith.divf %60, %61 : vector<128x128xbf16>
    %63 = arith.mulf %57, %62 : vector<128x128xbf16>
    %c0_51 = arith.constant 0 : index
    %c0_52 = arith.constant 0 : index
    %c0_53 = arith.constant 0 : index
    %64 = vector.load %arg6[%c0_51, %c0_52, %c0_53] : memref<1x128x128xbf16, #tpu.memory_space<vmem>>, vector<1x128x128xbf16>
    %65 = vector.shape_cast %64 : vector<1x128x128xbf16> to vector<128x128xbf16>
    %66 = vector.shape_cast %63 : vector<128x128xbf16> to vector<1x128x128xbf16>
    tpu.vector_store %arg6[%c0_51, %c0_52, %c0_53], %66 {strides = array<i32>} : memref<1x128x128xbf16, #tpu.memory_space<vmem>>, vector<1x128x128xbf16>,
    return
  }
  func.func @transform_0(%arg0: i32, %arg1: i32) -> (i32, i32, i32) {
    %c0_i32 = arith.constant 0 : i32
    %c0_i32_0 = arith.constant 0 : i32
    return %arg0, %arg1, %c0_i32 : i32, i32, i32
  }
  func.func @transform_1(%arg0: i32, %arg1: i32) -> (i32, i32, i32) {
    %c1_i32 = arith.constant 1 : i32
    %0 = arith.addi %arg1, %c1_i32 : i32
    %c1_i32_0 = arith.constant 1 : i32
    %1 = arith.muli %0, %c1_i32_0 : i32
    %c0_i32 = arith.constant 0 : i32
    %c0_i32_1 = arith.constant 0 : i32
    return %arg0, %1, %c0_i32 : i32, i32, i32
  }
  func.func @transform_2(%arg0: i32, %arg1: i32) -> (i32, i32, i32) {
    %c0_i32 = arith.constant 0 : i32
    %c0_i32_0 = arith.constant 0 : i32
    %c0_i32_1 = arith.constant 0 : i32
    %c0_i32_2 = arith.constant 0 : i32
    return %c0_i32, %c0_i32_0, %c0_i32_1 : i32, i32, i32
  }
  func.func @transform_3(%arg0: i32, %arg1: i32) -> (i32, i32) {
    %c0_i32 = arith.constant 0 : i32
    %c0_i32_0 = arith.constant 0 : i32
    %c0_i32_1 = arith.constant 0 : i32
    return %c0_i32, %c0_i32_0 : i32, i32
  }
  func.func @transform_4(%arg0: i32, %arg1: i32) -> (i32, i32, i32) {
    %c0_i32 = arith.constant 0 : i32
    %c0_i32_0 = arith.constant 0 : i32
    return %arg0, %arg1, %c0_i32 : i32, i32, i32
  }
}

</mosaic_0001>

<bundles_post_ra>
// kernel: spdconv_forward.1
= control target key start
LH: loop header
LB: loop body
LE: loop exit
PB: predicated region body
PF: predicated region fallthrough
CT: control target
= control target key end

     0   :  { %s2774_s15 = smov 0   ;;  %s2776_s16 = smov 0   ;;  %s3340_s0 = inlined_call_operand.vmem [shape: bf16[2,256,16], index: 0, kind: input, shape index: {}, may-alias: {0,1}]   ;;  %s3341_s1 = inlined_call_operand.vmem [shape: bf16[2,256,16], index: 1, kind: input, shape index: {}, may-alias: {0,1}]   ;;  %s3342_s2 = inlined_call_operand.vmem [shape: bf16[9,16,128], index: 2, kind: input, shape index: {}]   ;;  %s3343_s3 = inlined_call_operand.vmem [shape: f32[1,128], index: 3, kind: input, shape index: {}]   ;;  %s3344_s4 = inlined_call_operand.vmem [shape: bf16[2,128,128], index: 4, kind: output, shape index: {}]  }
   0x1   :  { %s2778_s17 = smov 0  }
   0x2 LB: > { %s26_s18 = sadd.s32 1, %s2742_s16  ;;  %p2197_p0 = scmp.ge.s32.totalorder %s2746_s17, 1  ;;  %s2746_s17 = sphi %s2778_s17, %s14_s17   ;;  %s2742_s16 = sphi %s2776_s16, %s3346_s16   ;;  %s2738_s15 = sphi %s2774_s15, %s3345_s15  }
   0x3   : > { %p28_p1 = scmp.ge.s32.totalorder %s26_s18, 2  ;;  %p204_p2 = scmp.lt.s32.totalorder %s2746_s17, 3 }
   0x5   : > { %s3348_s18 = smov (%p28_p1, %s26_s18), 0  ;;  %p205_p3 = pnand %p2197_p0, %p204_p2 }
   0x6   : > { %p249_p4 = scmp.lt.s32.totalorder (!%p205_p3), %s2738_s15, 1 }
   0x7   : > { %208 = sbr.rel (%p205_p3) target bundleno = 502 (0x1f6), region = 36 }
   0xc   : > { %v2490_v0 = vld [vmem:[%s3342_s2 + $0x8] sm:$0xff]  ;;  %v2491_v1 = vld [vmem:[%s3342_s2 + $0x10] sm:$0xff]  ;;  %s3350_s15 = smov (!%p249_p4, %s2738_s15), 1  ;;  %vm298_vm0 = vcmask 125952   ;;  %v2500_v2 = vld [vmem:[%s3342_s2 + $0x18] sm:$0xff]  ;;  %vm467_vm2 = vcmask 130048  }
   0xd   : > { %2599 = vmatpush.bf16.msra.mxu1 %v2490_v0  ;;  %2600 = vmatpush.bf16.msra.mxu2 %v2490_v0  ;;  %s2478_s23 = sshll.u32 %s3350_s15, 7  ;;  %v2489_v3 = vld [vmem:[%s3342_s2] sm:$0xff]  ;;  %vm392_vm1 = vsmask.f32 7424  ;;  %v2518_v59 = vld [vmem:[%s3342_s2 + $0x30] sm:$0xff]  ;;  %vm619_vm3 = vcmask 1046528  }
   0xe   : > { %2601 = vmatpush.bf16.msra.mxu3 %v2490_v0  ;;  %499 = vmatpush.bf16.msra.mxu0 %v2490_v0  ;;  %v2508_v4 = vld [vmem:[%s3342_s2 + $0x20] sm:$0xff]  ;;  %s2815_s6 = scalar_lea.vmem %s3340_s0, %s2478_s23  ;;  %s2480_s7 = sadd.s32 64, %s2478_s23 }
   0xf   : > { %v286_v5 = vld [vmem:[%s2815_s6 + $0x10] sm:$0xf]  ;;  %v287_v6 = vld [vmem:[%s2815_s6 + $0x14] sm:$0xf]  ;;  %v288_v7 = vld [vmem:[%s2815_s6 + $0x18] sm:$0xf]  ;;  %s2853_s10 = scalar_lea.vmem %s3341_s1, %s2480_s7 }
  0x10   : > { %v289_v8 = vld [vmem:[%s2815_s6 + $0x1c] sm:$0xf]  ;;  %303 = vst.msk [vmem:[#allocation2 + $0x10] sm:$0xf] %vm298_vm0, %v286_v5  ;;  %v290_v9 = vld [vmem:[%s2815_s6 + $0x20] sm:$0xf] }
  0x11   : > { %674 = vmatpush.bf16.msrb.mxu2 %v2491_v1  ;;  %570 = vmatpush.bf16.msrb.mxu1 %v2489_v3  ;;  %304 = vst.msk [vmem:[#allocation2 + $0x14] sm:$0xf] %vm298_vm0, %v287_v6  ;;  %v291_v10 = vld [vmem:[%s2815_s6 + $0x24] sm:$0xf]  ;;  %v292_v11 = vld [vmem:[%s2815_s6 + $0x28] sm:$0xf] }
  0x12   : > { %828 = vmatpush.bf16.msrb.mxu3 %v2500_v2  ;;  %1054 = vmatpush.bf16.msrb.mxu0 %v2508_v4  ;;  %305 = vst.msk [vmem:[#allocation2 + $0x18] sm:$0xf] %vm298_vm0, %v288_v7  ;;  %v293_v12 = vld [vmem:[%s2815_s6 + $0x2c] sm:$0xf]  ;;  %v294_v13 = vld [vmem:[%s2815_s6 + $0x30] sm:$0xf] }
  0x13   : > { %306 = vst.msk [vmem:[#allocation2 + $0x1c] sm:$0xf] %vm298_vm0, %v289_v8  ;;  %v295_v14 = vld [vmem:[%s2815_s6 + $0x34] sm:$0xf]  ;;  %v296_v15 = vld [vmem:[%s2815_s6 + $0x38] sm:$0xf] }
  0x14   : > { %307 = vst.msk [vmem:[#allocation2 + $0x20] sm:$0xf] %vm298_vm0, %v290_v9  ;;  %v297_v17 = vld [vmem:[%s2815_s6 + $0x3c] sm:$0xf]  ;;  %v282_v18 = vld [vmem:[%s2815_s6] sm:$0xf] }
  0x15   : > { %308 = vst.msk [vmem:[#allocation2 + $0x24] sm:$0xf] %vm298_vm0, %v291_v10  ;;  %v283_v19 = vld [vmem:[%s2815_s6 + $0x4] sm:$0xf]  ;;  %v284_v23 = vld [vmem:[%s2815_s6 + $0x8] sm:$0xf] }
  0x16   : > { %309 = vst.msk [vmem:[#allocation2 + $0x28] sm:$0xf] %vm298_vm0, %v292_v11  ;;  %v285_v24 = vld [vmem:[%s2815_s6 + $0xc] sm:$0xf]  ;;  %v315_v28 = vld [vmem:[%s2853_s10] sm:$0xf] }
  0x17   : > { %310 = vst.msk [vmem:[#allocation2 + $0x2c] sm:$0xf] %vm298_vm0, %v293_v12  ;;  %v2526_v1 = vld [vmem:[%s3342_s2 + $0x38] sm:$0xff]  ;;  %v2509_v2 = vld [vmem:[%s3342_s2 + $0x28] sm:$0xff]  ;;  %v2527_v3 = vld [vmem:[%s3342_s2 + $0x40] sm:$0xff]  ;;  %s2481_s25 = sshll.u32 %s3350_s15, 6 }
  0x18   : > { %v2838_v16 = vld [vmem:[#allocation2 + $0x10] sm:$0xff]  ;;  %311 = vst.msk [vmem:[#allocation2 + $0x30] sm:$0xf] %vm298_vm0, %v294_v13  ;;  %s3232_s27 = scalar_lea.vmem %s3344_s4, %s2481_s25 }
  0x19   : > { %312 = vst.msk [vmem:[#allocation2 + $0x34] sm:$0xf] %vm298_vm0, %v295_v14  ;;  %v409_v21 = vshll.u32 %v2838_v16, 16  ;;  %v413_v22 = vshrl.u32 %v2838_v16, 16 }
  0x1a   : > { %v2845_v20 = vld [vmem:[#allocation2 + $0x18] sm:$0xff]  ;;  %313 = vst.msk [vmem:[#allocation2 + $0x38] sm:$0xf] %vm298_vm0, %v296_v15 }
  0x1b   : > { %314 = vst.msk [vmem:[#allocation2 + $0x3c] sm:$0xf] %vm298_vm0, %v297_v17  ;;  %v2858_v25 = vrot.slane %v409_v21, 1  ;;  %v417_v26 = vshll.u32 %v2845_v20, 16  ;;  %v421_v52 = vshrl.u32 %v2845_v20, 16 }
  0x1c   : > { %v2861_v27 = vld [vmem:[#allocation2 + $0x20] sm:$0xff]  ;;  %299 = vst.msk [vmem:[#allocation2] sm:$0xf] %vm298_vm0, %v282_v18 }
  0x1d   : > { %300 = vst.msk [vmem:[#allocation2 + $0x4] sm:$0xf] %vm298_vm0, %v283_v19  ;;  %v415_v29 = vor.u32 %v413_v22, %v2858_v25  ;;  %v419_v30 = vrot.slane %v417_v26, 1  ;;  %v425_v32 = vshll.u32 %v2861_v27, 16  ;;  %v429_v33 = vshrl.u32 %v2861_v27, 16 }
  0x1e   : > { %v2867_v31 = vld [vmem:[#allocation2 + $0x28] sm:$0xff]  ;;  %301 = vst.msk [vmem:[#allocation2 + $0x8] sm:$0xf] %vm298_vm0, %v284_v23  ;;  %v2922_v23 = vld [vmem:[#allocation2 + $0x10] sm:$0xff] }
  0x1f   : > { %302 = vst.msk [vmem:[#allocation2 + $0xc] sm:$0xf] %vm298_vm0, %v285_v24  ;;  %v420_v34 = vsel %vm392_vm1, %v415_v29, %v419_v30  ;;  %v427_v35 = vrot.slane %v425_v32, 1  ;;  %v433_v36 = vshll.u32 %v2867_v31, 16  ;;  %v423_v61 = vor.u32 %v421_v52, %v419_v30 }
  0x20   : > { %v2875_v37 = vld [vmem:[#allocation2 + $0x30] sm:$0xff]  ;;  %321 = vst.msk [vmem:[#allocation2 + $0x40] sm:$0xf] %vm298_vm0, %v315_v28  ;;  %2240 = vmatmul.msk.bf16.vlgmr.msra.gmra.mxu1 %vm467_vm2, %v420_v34  ;;  %v437_v62 = vshrl.u32 %v2867_v31, 16  ;;  %v957_v30 = vshll.u32 %v2922_v23, 16 }
  0x21   : > { %v431_v38 = vor.u32 %v429_v33, %v427_v35  ;;  %v435_v39 = vrot.slane %v433_v36, 1  ;;  %v441_v41 = vshll.u32 %v2875_v37, 16  ;;  %v445_v42 = vshrl.u32 %v2875_v37, 16  ;;  %1173 = vmatpush.bf16.msra.mxu1 %v2509_v2  ;;  %v2932_v36 = vld [vmem:[#allocation2 + $0x18] sm:$0xff] }
  0x22   : > { %v2879_v40 = vld [vmem:[#allocation2 + $0x38] sm:$0xff]  ;;  %v428_v4 = vsel %vm392_vm1, %v423_v61, %v427_v35  ;;  %v959_v33 = vrot.slane %v957_v30, 1  ;;  %v623_v35 = vrot.slane %v2838_v16, 1 }
  0x23   : > { %v436_v43 = vsel %vm392_vm1, %v431_v38, %v435_v39  ;;  %v443_v44 = vrot.slane %v441_v41, 1  ;;  %v449_v45 = vshll.u32 %v2879_v40, 16  ;;  %v439_v5 = vor.u32 %v437_v62, %v435_v39  ;;  %v2582_v15 = vld [vmem:[#allocation2] sm:$0xe] }
  0x24   : > { %v2529_v46 = vld [vmem:[#allocation2] sm:$0xff]   ;;  %2242 = vmatmul.msk.bf16.vlgmr.msra.gmra.mxu2 %vm467_vm2, %v436_v43  ;;  %v453_v6 = vshrl.u32 %v2879_v40, 16  ;;  %v961_v39 = vshrl.u32 %v2922_v23, 16  ;;  %v965_v41 = vshll.u32 %v2932_v36, 16 }
  0x25   : > { %v394_v47 = vshrl.u32 %v2529_v46, 16  ;;  %v396_v48 = vshll.u32 %v2529_v46, 16  ;;  %v447_v49 = vor.u32 %v445_v42, %v443_v44  ;;  %v451_v50 = vrot.slane %v449_v45, 1  ;;  %1327 = vmatpush.bf16.msra.mxu2 %v2518_v59  ;;  %v2581_v14 = vld [vmem:[#allocation2] sm:$0xf0]  ;;  %v2493_v42 = vld [vmem:[#allocation2 + $0x10] sm:$0xff] }
  0x26   : > { %v2886_v51 = vld [vmem:[#allocation2 + $0x8] sm:$0xff]  ;;  %v444_v8 = vsel %vm392_vm1, %v439_v5, %v443_v44  ;;  %v2583_v18 = vor.u32 %v2582_v15, %v2581_v14  ;;  %v963_v43 = vor.u32 %v961_v39, %v959_v33  ;;  %v967_v44 = vrot.slane %v965_v41, 1  ;;  %v2495_v59 = vld [vmem:[#allocation2 + $0x20] sm:$0xff]  ;;  %v2497_v14 = vld [vmem:[#allocation2 + $0x30] sm:$0xff] }
  0x27   : > { %v398_v53 = vrot.slane %v396_v48, 1  ;;  %v345_v54 = vld [vmem:[#allocation2 + $0x40] sm:$0x1]  ;;  %v452_v55 = vsel %vm392_vm1, %v447_v49, %v451_v50  ;;  %v401_v56 = vshll.u32 %v2886_v51, 16  ;;  %v455_v9 = vor.u32 %v453_v6, %v451_v50  ;;  %v2584_v19 = vld [vmem:[#allocation2 + $0x8] sm:$0xff]  }
  0x28   : > { %v382_v57 = vunpack.c.l.b16 %v345_v54  ;;  %2244 = vmatmul.msk.bf16.vlgmr.msra.gmra.mxu3 %vm467_vm2, %v452_v55  ;;  %v405_v11 = vshrl.u32 %v2886_v51, 16  ;;  %v620_v21 = vrot.slane %v2583_v18, 1  ;;  %v621_v22 = vrot.slane %v2886_v51, 1  ;;  %v2956_v55 = vld [vmem:[#allocation2 + $0x28] sm:$0xff] }
  0x29   : > { %v399_v58 = vor.u32 %v398_v53, %v394_v47  ;;  %v403_v60 = vrot.slane %v401_v56, 1  ;;  %1553 = vmatpush.bf16.msra.mxu3 %v2526_v1  ;;  %v952_v24 = vshll.u32 %v2584_v19, 16  ;;  %v950_v28 = vshrl.u32 %v2584_v19, 16  ;;  %v2944_v47 = vld [vmem:[#allocation2 + $0x20] sm:$0xff]  ;;  %v2496_v5 = vld [vmem:[#allocation2 + $0x28] sm:$0xff] }
  0x2a   : > { %v2896_v63 = vpack.c.b16 %v382_v57, %v382_v57  ;;  %v622_v26 = vsel %vm619_vm3, %v620_v21, %v621_v22  ;;  %v624_v38 = vsel %vm619_vm3, %v621_v22, %v623_v35  ;;  %v968_v45 = vsel %vm392_vm1, %v963_v43, %v967_v44  ;;  %v316_v1 = vld [vmem:[%s2853_s10 + $0x4] sm:$0xf] }
  0x2b   : > { %v404_v0 = vsel %vm392_vm1, %v399_v58, %v403_v60  ;;  %v407_v13 = vor.u32 %v405_v11, %v403_v60  ;;  %v954_v29 = vrot.slane %v952_v24, 1  ;;  %v969_v49 = vshrl.u32 %v2932_v36, 16  ;;  %322 = vst.msk [vmem:[#allocation2 + $0x44] sm:$0xf] %vm298_vm0, %v316_v1 }
  0x2c   : > { %2238 = vmatmul.msk.bf16.vlgmr.msra.gmra.mxu0 %vm467_vm2, %v404_v0  ;;  %v457_v7 = vshll.u32 %v2896_v63, 16  ;;  %v973_v50 = vshll.u32 %v2944_v47, 16  ;;  %v977_v57 = vshrl.u32 %v2944_v47, 16  ;;  %v981_v58 = vshll.u32 %v2956_v55, 16  ;;  %v2968_v0 = vld [vmem:[#allocation2 + $0x30] sm:$0xff] }
  0x2d   : > { %1672 = vmatpush.bf16.msra.mxu0 %v2527_v3  ;;  %v412_v17 = vsel %vm392_vm1, %v407_v13, %v2858_v25  ;;  %v2492_v25 = vld [vmem:[#allocation2 + $0x8] sm:$0xff]  ;;  %v955_v32 = vor.u32 %v954_v29, %v950_v28  ;;  %v971_v52 = vor.u32 %v969_v49, %v967_v44  ;;  %v985_v3 = vshrl.u32 %v2956_v55, 16  ;;  %v2498_v28 = vld [vmem:[#allocation2 + $0x38] sm:$0xff] }
  0x2e   : > { %v459_v10 = vrot.slane %v457_v7, 1  ;;  %v975_v53 = vrot.slane %v973_v50, 1  ;;  %v983_v61 = vrot.slane %v981_v58, 1  ;;  %v635_v41 = vrot.slane %v2896_v63, 1  ;;  %v2585_v49 = vld [vmem:[#allocation2 + $0x8] sm:$0xf0] }
  0x2f   : > { %v960_v34 = vsel %vm392_vm1, %v955_v32, %v959_v33  ;;  %v2586_v50 = vld [vmem:[#allocation2 + $0x8] sm:$0xe] }
  0x30   : > { %2241 = vmatmul.msk.bf16.gmra.mxu1 %vm467_vm2, %v428_v4  ;;  %v460_v12 = vsel %vm392_vm1, %v455_v9, %v459_v10  ;;  %v976_v54 = vsel %vm392_vm1, %v971_v52, %v975_v53  ;;  %v979_v60 = vor.u32 %v977_v57, %v975_v53  ;;  %v989_v4 = vshll.u32 %v2968_v0, 16  ;;  %v317_v9 = vld [vmem:[%s2853_s10 + $0x8] sm:$0xf]  ;;  %v2984_v10 = vld [vmem:[#allocation2 + $0x38] sm:$0xff] }
  0x31   : > { %v987_v6 = vor.u32 %v985_v3, %v983_v61  ;;  %323 = vst.msk [vmem:[#allocation2 + $0x48] sm:$0xf] %vm298_vm0, %v317_v9  ;;  %v997_v13 = vshll.u32 %v2984_v10, 16  ;;  %v1001_v24 = vshrl.u32 %v2984_v10, 16 }
  0x32   : > { %v984_v62 = vsel %vm392_vm1, %v979_v60, %v983_v61  ;;  %v991_v7 = vrot.slane %v989_v4, 1  ;;  %v2998_v21 = vld [vmem:[#allocation2 + $0x40] sm:$0xff]  ;;  %v1120_v60 = vrot.slane %v2922_v23, 1  ;;  %v3037_v61 = vld [vmem:[#allocation2 + $0x18] sm:$0xff]  ;;  %v2510_v23 = vld [vmem:[#allocation2 + $0x10] sm:$0xff] }
  0x33   : > { %v2499_v63 = vld [vmem:[#allocation2 + $0x40] sm:$0xff] }
  0x34   : > { %2243 = vmatmul.msk.bf16.gmra.mxu2 %vm467_vm2, %v444_v8  ;;  %v992_v8 = vsel %vm392_vm1, %v987_v6, %v991_v7 }
  0x38   : > { %2245 = vmatmul.msk.bf16.gmra.mxu3 %vm467_vm2, %v460_v12  ;;  %v993_v12 = vshrl.u32 %v2968_v0, 16  ;;  %v902_v32 = vld [vmem:[#allocation2 + $0x48] sm:$0x1] }
  0x3a   : > { %v995_v15 = vor.u32 %v993_v12, %v991_v7  ;;  %v2589_v7 = vld [vmem:[#allocation2 + $0x10] sm:$0xf0] }
  0x3c   : > { %2239 = vmatmul.msk.bf16.gmra.mxu0 %vm467_vm2, %v412_v17  ;;  %v999_v17 = vrot.slane %v997_v13, 1 }
  0x3e   : > { %v1000_v18 = vsel %vm392_vm1, %v995_v15, %v999_v17  ;;  %v1003_v29 = vor.u32 %v1001_v24, %v999_v17 }
  0x40   : > { %2250 = vmatmul.msk.bf16.vlgmr.msrb.gmra.mxu1 %vm467_vm2, %v2529_v46  ;;  %v625_v46 = vrot.slane %v2845_v20, 1 }
  0x42   : > { %v626_v48 = vsel %vm619_vm3, %v623_v35, %v625_v46  ;;  %v939_v35 = vunpack.c.l.b16 %v902_v32  ;;  %v2520_v32 = vld [vmem:[#allocation2 + $0x20] sm:$0xff] }
  0x44   : > { %2264 = vmatmul.msk.bf16.vlgmr.msrb.gmra.mxu2 %vm467_vm2, %v622_v26  ;;  %v1005_v26 = vshll.u32 %v2998_v21, 16 }
  0x46   : > { %v1007_v30 = vrot.slane %v1005_v26, 1 }
  0x48   : > { %2310 = vmatmul.msk.bf16.vlgmr.msrb.gmra.mxu3 %vm467_vm2, %v2492_v25 }
  0x4c   : > { %2352 = vmatmul.msk.bf16.vlgmr.msrb.gmra.mxu0 %vm467_vm2, %v960_v34 }
  0x50   : > { %2251 = vmatmul.msk.bf16.gmra.mxu1 %vm467_vm2, %v2886_v51  ;;  %v2494_v51 = vld [vmem:[#allocation2 + $0x18] sm:$0xff] }
  0x54   : > { %2265 = vmatmul.msk.bf16.gmra.mxu2 %vm467_vm2, %v624_v38 }
  0x58   : > { %2311 = vmatmul.msk.bf16.gmra.mxu3 %vm467_vm2, %v2493_v42  ;;  %v3018_v42 = vpack.c.b16 %v939_v35, %v939_v35 }
  0x5c   : > { %2353 = vmatmul.msk.bf16.gmra.mxu0 %vm467_vm2, %v968_v45 }
  0x60   : > { %2252 = vmatmul.msk.bf16.gmra.mxu1 %vm467_vm2, %v2838_v16  ;;  %v627_v16 = vrot.slane %v2861_v27, 1 }
  0x62   : > { %v628_v56 = vsel %vm619_vm3, %v625_v46, %v627_v16  ;;  %v1009_v46 = vshrl.u32 %v2998_v21, 16 }
  0x64   : > { %2266 = vmatmul.msk.bf16.gmra.mxu2 %vm467_vm2, %v626_v48  ;;  %v1013_v48 = vshll.u32 %v3018_v42, 16  ;;  %v1011_v52 = vor.u32 %v1009_v46, %v1007_v30 }
  0x66   : > { %v1015_v53 = vrot.slane %v1013_v48, 1 }
  0x68   : > { %2312 = vmatmul.msk.bf16.gmra.mxu3 %vm467_vm2, %v2494_v51  ;;  %v1016_v58 = vsel %vm392_vm1, %v1011_v52, %v1015_v53 }
  0x6c   : > { %2354 = vmatmul.msk.bf16.gmra.mxu0 %vm467_vm2, %v976_v54 }
  0x70   : > { %2253 = vmatmul.msk.bf16.gmra.mxu1 %vm467_vm2, %v2845_v20  ;;  %v629_v20 = vrot.slane %v2867_v31, 1 }
  0x72   : > { %v630_v2 = vsel %vm619_vm3, %v627_v16, %v629_v20  ;;  %v2587_v16 = vor.u32 %v2586_v50, %v2585_v49 }
  0x74   : > { %2267 = vmatmul.msk.bf16.gmra.mxu2 %vm467_vm2, %v628_v56 }
  0x78   : > { %2313 = vmatmul.msk.bf16.gmra.mxu3 %vm467_vm2, %v2495_v59  ;;  %v1119_v59 = vrot.slane %v2587_v16, 1 }
  0x7c   : > { %2355 = vmatmul.msk.bf16.gmra.mxu0 %vm467_vm2, %v984_v62 }
  0x80   : > { %2254 = vmatmul.msk.bf16.gmra.mxu1 %vm467_vm2, %v2861_v27  ;;  %v631_v27 = vrot.slane %v2875_v37, 1 }
  0x82   : > { %v632_v11 = vsel %vm619_vm3, %v629_v20, %v631_v27 }
  0x84   : > { %2268 = vmatmul.msk.bf16.gmra.mxu2 %vm467_vm2, %v630_v2  ;;  %v1121_v2 = vsel %vm619_vm3, %v1119_v59, %v1120_v60  ;;  %v1621_v59 = vrot.slane %v2520_v32, 1 }
  0x88   : > { %2314 = vmatmul.msk.bf16.gmra.mxu3 %vm467_vm2, %v2496_v5  ;;  %v1456_v5 = vshll.u32 %v3037_v61, 16 }
  0x8a   : > { %v1458_v12 = vrot.slane %v1456_v5, 1  ;;  %v2521_v5 = vld [vmem:[#allocation2 + $0x28] sm:$0xff] }
  0x8c   : > { %2356 = vmatmul.msk.bf16.gmra.mxu0 %vm467_vm2, %v992_v8  ;;  %v2590_v8 = vld [vmem:[#allocation2 + $0x10] sm:$0xe] }
  0x8d   : > { %v2591_v13 = vor.u32 %v2590_v8, %v2589_v7 }
  0x8f   : > { %v1618_v17 = vrot.slane %v2591_v13, 1 }
  0x90   : > { %2255 = vmatmul.msk.bf16.gmra.mxu1 %vm467_vm2, %v2867_v31  ;;  %v633_v31 = vrot.slane %v2879_v40, 1 }
  0x92   : > { %v634_v22 = vsel %vm619_vm3, %v631_v27, %v633_v31  ;;  %v636_v45 = vsel %vm619_vm3, %v633_v31, %v635_v41 }
  0x94   : > { %2269 = vmatmul.msk.bf16.gmra.mxu2 %vm467_vm2, %v632_v11 }
  0x98   : > { %2315 = vmatmul.msk.bf16.gmra.mxu3 %vm467_vm2, %v2497_v14 }
  0x9c   : > { %2357 = vmatmul.msk.bf16.gmra.mxu0 %vm467_vm2, %v1000_v18  ;;  %v1619_v18 = vrot.slane %v3037_v61, 1 }
  0x9d   : > { %v2995_v19 = vpop.f32.mrf.mxu1 }
  0xa0   : > { %2256 = vmatmul.msk.bf16.gmra.mxu1 %vm467_vm2, %v2875_v37  ;;  %v1008_v37 = vsel %vm392_vm1, %v1003_v29, %v1007_v30  ;;  %v1620_v29 = vsel %vm619_vm3, %v1618_v17, %v1619_v18  ;;  %v1122_v30 = vrot.slane %v2932_v36, 1 }
  0xa2   : > { %v1123_v41 = vsel %vm619_vm3, %v1120_v60, %v1122_v30 }
  0xa4   : > { %2270 = vmatmul.msk.bf16.gmra.mxu2 %vm467_vm2, %v634_v22 }
  0xa5   : > { %v3006_v25 = vpop.f32.mrf.mxu1 }
  0xa7   : > { %v3008_v33 = vpop.f32.mrf.mxu2 }
  0xa8   : > { %2316 = vmatmul.msk.bf16.gmra.mxu3 %vm467_vm2, %v2498_v28 }
  0xa9   : > { %v501_v34 = vpop.f32.mrf.mxu0 }
  0xab   : > { %v3012_v38 = vpop.f32.mrf.mxu3 }
  0xac   : > { %2358 = vmatmul.msk.bf16.gmra.mxu0 %vm467_vm2, %v1008_v37 }
  0xad   : > { %v3015_v39 = vpop.f32.mrf.mxu1 }
  0xaf   : > { %v3020_v43 = vpop.f32.mrf.mxu2 }
  0xb0   : > { %2257 = vmatmul.msk.bf16.gmra.mxu1 %vm467_vm2, %v2879_v40  ;;  %v2588_v40 = vld [vmem:[#allocation2 + $0x10] sm:$0xff]  }
  0xb1   : > { %v503_v44 = vpop.f32.mrf.mxu0  ;;  %v1451_v62 = vshll.u32 %v2588_v40, 16  ;;  %v1449_v3 = vshrl.u32 %v2588_v40, 16 }
  0xb3   : > { %v3027_v51 = vpop.f32.mrf.mxu3  ;;  %v1453_v4 = vrot.slane %v1451_v62, 1 }
  0xb4   : > { %2271 = vmatmul.msk.bf16.gmra.mxu2 %vm467_vm2, %v636_v45  ;;  %v1460_v45 = vshrl.u32 %v3037_v61, 16 }
  0xb5   : > { %v3030_v54 = vpop.f32.mrf.mxu1  ;;  %v1454_v11 = vor.u32 %v1453_v4, %v1449_v3  ;;  %v1622_v3 = vsel %vm619_vm3, %v1619_v18, %v1621_v59  ;;  %v1124_v4 = vrot.slane %v2944_v47, 1  ;;  %v2512_v18 = vld [vmem:[#allocation2 + $0x20] sm:$0xff] }
  0xb6   : > { %v1462_v52 = vor.u32 %v1460_v45, %v1458_v12  ;;  %v1126_v45 = vrot.slane %v2956_v55, 1  ;;  %v2513_v55 = vld [vmem:[#allocation2 + $0x28] sm:$0xff] }
  0xb7   : > { %v3032_v56 = vpop.f32.mrf.mxu2  ;;  %v1459_v15 = vsel %vm392_vm1, %v1454_v11, %v1458_v12  ;;  %v1472_v11 = vshll.u32 %v2521_v5, 16 }
  0xb8   : > { %2317 = vmatmul.msk.bf16.gmra.mxu3 %vm467_vm2, %v2499_v63  ;;  %v2511_v63 = vld [vmem:[#allocation2 + $0x18] sm:$0xff] }
  0xb9   : > { %v506_v57 = vpop.f32.mrf.mxu0 }
  0xbb   : > { %v3039_v20 = vpop.f32.mrf.mxu3 }
  0xbc   : > { %2359 = vmatmul.msk.bf16.gmra.mxu0 %vm467_vm2, %v1016_v58 }
  0xbd   : > { %v572_v1 = vpop.f32.mrf.mxu1 }
  0xbe   : > { %v573_v6 = vadd.f32 %v572_v1, %v501_v34 }
  0xbf   : > { %v3044_v9 = vpop.f32.mrf.mxu2 }
  0xc0   : > { %2366 = vmatmul.msk.bf16.vlgmr.msra.gmra.mxu1 %vm467_vm2, %v1121_v2 }
  0xc1   : > { %v508_v27 = vpop.f32.mrf.mxu0 }
  0xc3   : > { %v3047_v14 = vpop.f32.mrf.mxu3 }
  0xc4   : > { %2412 = vmatmul.msk.bf16.vlgmr.msra.gmra.mxu2 %vm467_vm2, %v2510_v23  ;;  %v1125_v23 = vsel %vm619_vm3, %v1122_v30, %v1124_v4 }
  0xc5   : > { %v574_v31 = vpop.f32.mrf.mxu1 }
  0xc6   : > { %v575_v22 = vadd.f32 %v574_v31, %v503_v44  ;;  %v1464_v44 = vshll.u32 %v2520_v32, 16 }
  0xc7   : > { %v676_v24 = vpop.f32.mrf.mxu2 }
  0xc8   : > { %2454 = vmatmul.msk.bf16.vlgmr.msra.gmra.mxu3 %vm467_vm2, %v1459_v15  ;;  %v716_v26 = vadd.f32 %v676_v24, %v573_v6  ;;  %v1466_v53 = vrot.slane %v1464_v44, 1  ;;  %v3082_v44 = vld [vmem:[#allocation2 + $0x30] sm:$0xff] }
  0xc9   : > { %v1056_v28 = vpop.f32.mrf.mxu0 }
  0xca   : > { %v1467_v58 = vsel %vm392_vm1, %v1462_v52, %v1466_v53 }
  0xcb   : > { %v830_v34 = vpop.f32.mrf.mxu3 }
  0xcc   : > { %2468 = vmatmul.msk.bf16.vlgmr.msra.gmra.mxu0 %vm467_vm2, %v1620_v29  ;;  %v870_v37 = vadd.f32 %v830_v34, %v716_v26  ;;  %v1623_v29 = vrot.slane %v2521_v5, 1 }
  0xcd   : > { %v577_v35 = vpop.f32.mrf.mxu1 }
  0xce   : > { %v578_v46 = vadd.f32 %v577_v35, %v506_v57  ;;  %v3058_v48 = vadd.f32 %v1056_v28, %v870_v37 }
  0xcf   : > { %v678_v49 = vpop.f32.mrf.mxu2 }
  0xd0   : > { %v717_v50 = vadd.f32 %v678_v49, %v575_v22  ;;  %2367 = vmatmul.msk.bf16.gmra.mxu1 %vm467_vm2, %v1123_v41  ;;  %v1474_v22 = vrot.slane %v1472_v11, 1  ;;  %v1624_v41 = vsel %vm619_vm3, %v1621_v59, %v1623_v29 }
  0xd1   : > { %v1058_v36 = vpop.f32.mrf.mxu0 }
  0xd3   : > { %v832_v16 = vpop.f32.mrf.mxu3 }
  0xd4   : > { %v871_v40 = vadd.f32 %v832_v16, %v717_v50  ;;  %2413 = vmatmul.msk.bf16.gmra.mxu2 %vm467_vm2, %v2511_v63  ;;  %v1476_v63 = vshrl.u32 %v2521_v5, 16 }
  0xd5   : > { %v579_v60 = vpop.f32.mrf.mxu1 }
  0xd6   : > { %v580_v61 = vadd.f32 %v579_v60, %v508_v27  ;;  %v3063_v57 = vadd.f32 %v1058_v36, %v871_v40  ;;  %v1468_v27 = vshrl.u32 %v2520_v32, 16  ;;  %v1480_v36 = vshll.u32 %v3082_v44, 16 }
  0xd7   : > { %v681_v62 = vpop.f32.mrf.mxu2  ;;  %v1478_v59 = vor.u32 %v1476_v63, %v1474_v22  ;;  %v1130_v63 = vrot.slane %v2984_v10, 1 }
  0xd8   : > { %2455 = vmatmul.msk.bf16.gmra.mxu3 %vm467_vm2, %v1467_v58  ;;  %v718_v1 = vadd.f32 %v681_v62, %v578_v46  ;;  %v1470_v31 = vor.u32 %v1468_v27, %v1466_v53  ;;  %v1482_v60 = vrot.slane %v1480_v36, 1  ;;  %v3100_v27 = vld [vmem:[#allocation2 + $0x38] sm:$0xff]  ;;  %v3121_v36 = vld [vmem:[#allocation2 + $0x40] sm:$0xff] }
  0xd9   : > { %v1061_v2 = vpop.f32.mrf.mxu0 }
  0xda   : > { %v1475_v28 = vsel %vm392_vm1, %v1470_v31, %v1474_v22 }
  0xdb   : > { %v835_v6 = vpop.f32.mrf.mxu3 }
  0xdc   : > { %2469 = vmatmul.msk.bf16.gmra.mxu0 %vm467_vm2, %v1622_v3  ;;  %v872_v7 = vadd.f32 %v835_v6, %v718_v1  ;;  %v1483_v1 = vsel %vm392_vm1, %v1478_v59, %v1482_v60 }
  0xdd   : > { %v582_v8 = vpop.f32.mrf.mxu1 }
  0xde   : > { %v583_v12 = vadd.f32 %v582_v8, %v2995_v19  ;;  %v3071_v13 = vadd.f32 %v1061_v2, %v872_v7  ;;  %v1625_v2 = vrot.slane %v3082_v44, 1 }
  0xdf   : > { %v683_v15 = vpop.f32.mrf.mxu2 }
  0xe0   : > { %v719_v17 = vadd.f32 %v683_v15, %v580_v61  ;;  %2368 = vmatmul.msk.bf16.gmra.mxu1 %vm467_vm2, %v1125_v23  ;;  %v1626_v8 = vsel %vm619_vm3, %v1623_v29, %v1625_v2  ;;  %v1128_v23 = vrot.slane %v2968_v0, 1 }
  0xe1   : > { %v1063_v47 = vpop.f32.mrf.mxu0 }
  0xe3   : > { %v837_v24 = vpop.f32.mrf.mxu3 }
  0xe4   : > { %v873_v26 = vadd.f32 %v837_v24, %v719_v17  ;;  %2414 = vmatmul.msk.bf16.gmra.mxu2 %vm467_vm2, %v2512_v18  ;;  %v1129_v17 = vsel %vm619_vm3, %v1126_v45, %v1128_v23  ;;  %v1484_v18 = vshrl.u32 %v3082_v44, 16  ;;  %v2514_v24 = vld [vmem:[#allocation2 + $0x30] sm:$0xff] }
  0xe5   : > { %v584_v30 = vpop.f32.mrf.mxu1 }
  0xe6   : > { %v585_v19 = vadd.f32 %v584_v30, %v3006_v25  ;;  %v3077_v32 = vadd.f32 %v1063_v47, %v873_v26  ;;  %v1127_v25 = vsel %vm619_vm3, %v1124_v4, %v1126_v45  ;;  %v1488_v47 = vshll.u32 %v3100_v27, 16 }
  0xe7   : > { %v686_v34 = vpop.f32.mrf.mxu2 }
  0xe8   : > { %2456 = vmatmul.msk.bf16.gmra.mxu3 %vm467_vm2, %v1475_v28  ;;  %v720_v37 = vadd.f32 %v686_v34, %v583_v12  ;;  %v318_v12 = vld [vmem:[%s2853_s10 + $0xc] sm:$0xf]  ;;  %v1486_v28 = vor.u32 %v1484_v18, %v1482_v60  ;;  %v1490_v29 = vrot.slane %v1488_v47, 1 }
  0xe9   : > { %v1066_v35 = vpop.f32.mrf.mxu0  ;;  %324 = vst.msk [vmem:[#allocation2 + $0x4c] sm:$0xf] %vm298_vm0, %v318_v12 }
  0xea   : > { %v1491_v34 = vsel %vm392_vm1, %v1486_v28, %v1490_v29 }
  0xeb   : > { %v840_v46 = vpop.f32.mrf.mxu3 }
  0xec   : > { %2470 = vmatmul.msk.bf16.gmra.mxu0 %vm467_vm2, %v1624_v41  ;;  %v874_v49 = vadd.f32 %v840_v46, %v720_v37  ;;  %v1627_v37 = vrot.slane %v3100_v27, 1 }
  0xed   : > { %v587_v50 = vpop.f32.mrf.mxu1 }
  0xee   : > { %v588_v52 = vadd.f32 %v587_v50, %v3015_v39  ;;  %v3088_v53 = vadd.f32 %v1066_v35, %v874_v49  ;;  %v319_v49 = vld [vmem:[%s2853_s10 + $0x10] sm:$0xf] }
  0xef   : > { %v688_v16 = vpop.f32.mrf.mxu2  ;;  %325 = vst.msk [vmem:[#allocation2 + $0x50] sm:$0xf] %vm298_vm0, %v319_v49 }
  0xf0   : > { %v721_v40 = vadd.f32 %v688_v16, %v585_v19  ;;  %2369 = vmatmul.msk.bf16.gmra.mxu1 %vm467_vm2, %v1127_v25  ;;  %v1628_v25 = vsel %vm619_vm3, %v1625_v2, %v1627_v37 }
  0xf1   : > { %v1068_v58 = vpop.f32.mrf.mxu0 }
  0xf3   : > { %v842_v61 = vpop.f32.mrf.mxu3 }
  0xf4   : > { %v875_v62 = vadd.f32 %v842_v61, %v721_v40  ;;  %2415 = vmatmul.msk.bf16.gmra.mxu2 %vm467_vm2, %v2513_v55  ;;  %v1131_v40 = vsel %vm619_vm3, %v1128_v23, %v1130_v63  ;;  %v1492_v55 = vshrl.u32 %v3100_v27, 16 }
  0xf5   : > { %v589_v39 = vpop.f32.mrf.mxu1 }
  0xf6   : > { %v590_v3 = vadd.f32 %v589_v39, %v3030_v54  ;;  %v3095_v4 = vadd.f32 %v1068_v58, %v875_v62  ;;  %v1496_v58 = vshll.u32 %v3121_v36, 16  ;;  %v2515_v62 = vld [vmem:[#allocation2 + $0x38] sm:$0xff]  ;;  %v1494_v2 = vor.u32 %v1492_v55, %v1490_v29 }
  0xf7   : > { %v691_v5 = vpop.f32.mrf.mxu2 }
  0xf8   : > { %2457 = vmatmul.msk.bf16.gmra.mxu3 %vm467_vm2, %v1483_v1  ;;  %v722_v6 = vadd.f32 %v691_v5, %v588_v52  ;;  %v1498_v39 = vrot.slane %v1496_v58, 1 }
  0xf9   : > { %v1071_v7 = vpop.f32.mrf.mxu0 }
  0xfb   : > { %v845_v11 = vpop.f32.mrf.mxu3 }
  0xfc   : > { %2471 = vmatmul.msk.bf16.gmra.mxu0 %vm467_vm2, %v1626_v8  ;;  %v876_v15 = vadd.f32 %v845_v11, %v722_v6  ;;  %v1499_v6 = vsel %vm392_vm1, %v1494_v2, %v1498_v39 }
  0xfd   : > { %v592_v54 = vpop.f32.mrf.mxu1 }
  0xfe   : > { %v3108_v31 = vadd.f32 %v1071_v7, %v876_v15  ;;  %v593_v41 = vadd.f32 %v592_v54, %v3008_v33  ;;  %v1629_v7 = vrot.slane %v3121_v36, 1  ;;  %v1132_v54 = vrot.slane %v2998_v21, 1  ;;  %v2516_v21 = vld [vmem:[#allocation2 + $0x40] sm:$0xff] }
  0xff   : > { %v693_v22 = vpop.f32.mrf.mxu2 }
 0x100   : > { %v723_v0 = vadd.f32 %v693_v22, %v590_v3  ;;  %2370 = vmatmul.msk.bf16.gmra.mxu1 %vm467_vm2, %v1129_v17  ;;  %v1630_v15 = vsel %vm619_vm3, %v1627_v37, %v1629_v7  ;;  %v3141_v17 = vld [vmem:[#allocation2 + $0x48] sm:$0xff] }
 0x101   : > { %v1073_v26 = vpop.f32.mrf.mxu0  ;;  %v1631_v49 = vrot.slane %v3141_v17, 1 }
 0x103   : > { %v847_v30 = vpop.f32.mrf.mxu3 }
 0x104   : > { %v877_v19 = vadd.f32 %v847_v30, %v723_v0  ;;  %2416 = vmatmul.msk.bf16.gmra.mxu2 %vm467_vm2, %v2514_v24  ;;  %v1500_v0 = vshrl.u32 %v3121_v36, 16  ;;  %v1504_v24 = vshll.u32 %v3141_v17, 16 }
 0x105   : > { %v594_v35 = vpop.f32.mrf.mxu1 }
 0x106   : > { %v3115_v45 = vadd.f32 %v1073_v26, %v877_v19  ;;  %v595_v59 = vadd.f32 %v594_v35, %v3020_v43  ;;  %v1506_v37 = vrot.slane %v1504_v24, 1  ;;  %v1401_v35 = vld [vmem:[#allocation2 + $0x50] sm:$0x1] }
 0x107   : > { %v696_v44 = vpop.f32.mrf.mxu2 }
 0x108   : > { %2458 = vmatmul.msk.bf16.gmra.mxu3 %vm467_vm2, %v1491_v34  ;;  %v724_v46 = vadd.f32 %v696_v44, %v593_v41  ;;  %v1502_v34 = vor.u32 %v1500_v0, %v1498_v39 }
 0x109   : > { %v1076_v50 = vpop.f32.mrf.mxu0 }
 0x10b   : > { %v850_v52 = vpop.f32.mrf.mxu3 }
 0x10c   : > { %2472 = vmatmul.msk.bf16.gmra.mxu0 %vm467_vm2, %v1628_v25  ;;  %v878_v33 = vadd.f32 %v850_v52, %v724_v46  ;;  %v1507_v46 = vsel %vm392_vm1, %v1502_v34, %v1506_v37 }
 0x10d   : > { %v597_v16 = vpop.f32.mrf.mxu1 }
 0x10e   : > { %v3129_v60 = vadd.f32 %v1076_v50, %v878_v33  ;;  %v598_v43 = vadd.f32 %v597_v16, %v3032_v56  ;;  %v1133_v56 = vsel %vm619_vm3, %v1130_v63, %v1132_v54  ;;  %v1438_v50 = vunpack.c.l.b16 %v1401_v35 }
 0x10f   : > { %v698_v10 = vpop.f32.mrf.mxu2  ;;  %v1632_v16 = vsel %vm619_vm3, %v1629_v7, %v1631_v49 }
 0x110   : > { %v725_v61 = vadd.f32 %v698_v10, %v595_v59  ;;  %2371 = vmatmul.msk.bf16.gmra.mxu1 %vm467_vm2, %v1131_v40  ;;  %v1134_v40 = vrot.slane %v3018_v42, 1  ;;  %v1447_v55 = vpack.c.b16 %v1438_v50, %v1438_v50  ;;  %v2517_v42 = vld [vmem:[#allocation2 + $0x48] sm:$0xff] }
 0x111   : > { %v1078_v1 = vpop.f32.mrf.mxu0 }
 0x113   : > { %v852_v3 = vpop.f32.mrf.mxu3 }
 0x114   : > { %v879_v5 = vadd.f32 %v852_v3, %v725_v61  ;;  %2417 = vmatmul.msk.bf16.gmra.mxu2 %vm467_vm2, %v2515_v62  ;;  %v1135_v61 = vsel %vm619_vm3, %v1132_v54, %v1134_v40  ;;  %v1512_v62 = vshll.u32 %v1447_v55, 16 }
 0x115   : > { %v599_v8 = vpop.f32.mrf.mxu1 }
 0x116   : > { %v3136_v23 = vadd.f32 %v1078_v1, %v879_v5  ;;  %v600_v26 = vadd.f32 %v599_v8, %v3044_v9  ;;  %v1514_v7 = vrot.slane %v1512_v62, 1 }
 0x117   : > { %v701_v27 = vpop.f32.mrf.mxu2 }
 0x118   : > { %2459 = vmatmul.msk.bf16.gmra.mxu3 %vm467_vm2, %v1499_v6  ;;  %v726_v11 = vadd.f32 %v701_v27, %v598_v43 }
 0x119   : > { %v1081_v12 = vpop.f32.mrf.mxu0 }
 0x11b   : > { %v855_v18 = vpop.f32.mrf.mxu3 }
 0x11c   : > { %2473 = vmatmul.msk.bf16.gmra.mxu0 %vm467_vm2, %v1630_v15  ;;  %v880_v47 = vadd.f32 %v855_v18, %v726_v11  ;;  %v1633_v11 = vrot.slane %v1447_v55, 1 }
 0x11d   : > { %v602_v22 = vpop.f32.mrf.mxu1 }
 0x11e   : > { %v3148_v28 = vadd.f32 %v1081_v12, %v880_v47  ;;  %v603_v25 = vadd.f32 %v602_v22, %v3012_v38  ;;  %v1508_v38 = vshrl.u32 %v3141_v17, 16  ;;  %v1634_v47 = vsel %vm619_vm3, %v1631_v49, %v1633_v11 }
 0x11f   : > { %v703_v29 = vpop.f32.mrf.mxu2 }
 0x120   : > { %v727_v30 = vadd.f32 %v703_v29, %v600_v26  ;;  %2372 = vmatmul.msk.bf16.gmra.mxu1 %vm467_vm2, %v1133_v56  ;;  %v1510_v6 = vor.u32 %v1508_v38, %v1506_v37 }
 0x121   : > { %v1083_v19 = vpop.f32.mrf.mxu0 }
 0x122   : > { %v1515_v27 = vsel %vm392_vm1, %v1510_v6, %v1514_v7 }
 0x123   : > { %v857_v41 = vpop.f32.mrf.mxu3 }
 0x124   : > { %v881_v44 = vadd.f32 %v857_v41, %v727_v30  ;;  %2418 = vmatmul.msk.bf16.gmra.mxu2 %vm467_vm2, %v2516_v21 }
 0x125   : > { %v604_v9 = vpop.f32.mrf.mxu1 }
 0x126   : > { %v3155_v63 = vadd.f32 %v1083_v19, %v881_v44  ;;  %v605_v1 = vadd.f32 %v604_v9, %v3027_v51 }
 0x127   : > { %v706_v36 = vpop.f32.mrf.mxu2 }
 0x128   : > { %2460 = vmatmul.msk.bf16.gmra.mxu3 %vm467_vm2, %v1507_v46  ;;  %v728_v52 = vadd.f32 %v706_v36, %v603_v25 }
 0x129   : > { %v1086_v33 = vpop.f32.mrf.mxu0 }
 0x12b   : > { %v860_v58 = vpop.f32.mrf.mxu3 }
 0x12c   : > { %2474 = vmatmul.msk.bf16.gmra.mxu0 %vm467_vm2, %v1632_v16  ;;  %v882_v59 = vadd.f32 %v860_v58, %v728_v52 }
 0x12d   : > { %v607_v10 = vpop.f32.mrf.mxu1 }
 0x12e   : > { %v3164_v2 = vadd.f32 %v1086_v33, %v882_v59  ;;  %v608_v51 = vadd.f32 %v607_v10, %v3039_v20 }
 0x12f   : > { %v708_v39 = vpop.f32.mrf.mxu2 }
 0x130   : > { %v729_v3 = vadd.f32 %v708_v39, %v605_v1  ;;  %2373 = vmatmul.msk.bf16.gmra.mxu1 %vm467_vm2, %v1135_v61 }
 0x131   : > { %v1088_v5 = vpop.f32.mrf.mxu0 }
 0x133   : > { %v862_v8 = vpop.f32.mrf.mxu3 }
 0x134   : > { %v883_v43 = vadd.f32 %v862_v8, %v729_v3  ;;  %2419 = vmatmul.msk.bf16.gmra.mxu2 %vm467_vm2, %v2517_v42 }
 0x135   : > { %v609_v12 = vpop.f32.mrf.mxu1 }
 0x136   : > { %v3170_v15 = vadd.f32 %v1088_v5, %v883_v43  ;;  %v610_v24 = vadd.f32 %v609_v12, %v3047_v14  ;;  %v3184_v14 = vld [vmem:[%s3343_s3] ss:$0 sm:$0xff] }
 0x137   : > { %v711_v54 = vpop.f32.mrf.mxu2 }
 0x138   : > { %2461 = vmatmul.msk.bf16.gmra.mxu3 %vm467_vm2, %v1515_v27  ;;  %v730_v17 = vadd.f32 %v711_v54, %v608_v51 }
 0x139   : > { %v1091_v18 = vpop.f32.mrf.mxu0 }
 0x13b   : > { %v865_v22 = vpop.f32.mrf.mxu3 }
 0x13c   : > { %2475 = vmatmul.msk.bf16.gmra.mxu0 %vm467_vm2, %v1634_v47  ;;  %v884_v56 = vadd.f32 %v865_v22, %v730_v17 }
 0x13d   : > { %v1175_v0 = vpop.f32.mrf.mxu1 }
 0x13e   : > { %v3176_v26 = vadd.f32 %v1091_v18, %v884_v56  ;;  %v1215_v37 = vadd.f32 %v1175_v0, %v3058_v48 }
 0x13f   : > { %v713_v29 = vpop.f32.mrf.mxu2 }
 0x140   : > { %v731_v20 = vadd.f32 %v713_v29, %v610_v24 }
 0x141   : > { %v1093_v30 = vpop.f32.mrf.mxu0 }
 0x143   : > { %v867_v21 = vpop.f32.mrf.mxu3 }
 0x144   : > { %v885_v19 = vadd.f32 %v867_v21, %v731_v20 }
 0x145   : > { %v1177_v34 = vpop.f32.mrf.mxu1 }
 0x146   : > { %v3179_v35 = vadd.f32 %v1093_v30, %v885_v19  ;;  %v1216_v36 = vadd.f32 %v1177_v34, %v3063_v57 }
 0x147   : > { %v1329_v41 = vpop.f32.mrf.mxu2 }
 0x148   : > { %v1369_v44 = vadd.f32 %v1329_v41, %v1215_v37 }
 0x149   : > { %v1674_v46 = vpop.f32.mrf.mxu0 }
 0x14b   : > { %v1555_v49 = vpop.f32.mrf.mxu3 }
 0x14c   : > { %v1595_v9 = vadd.f32 %v1555_v49, %v1369_v44 }
 0x14d   : > { %v1180_v50 = vpop.f32.mrf.mxu1 }
 0x14e   : > { %v1714_v25 = vadd.f32 %v1674_v46, %v1595_v9  ;;  %v1217_v62 = vadd.f32 %v1180_v50, %v3071_v13 }
 0x14f   : > { %v1331_v52 = vpop.f32.mrf.mxu2 }
 0x150   : > { %v1734_v33 = vadd.f32 %v3184_v14, %v1714_v25  ;;  %v1370_v48 = vadd.f32 %v1331_v52, %v1216_v36 }
 0x151   : > { %v1676_v16 = vpop.f32.mrf.mxu0 }
 0x152   : > { %v3188_v40 = vpack.c.bf16 %v1734_v33, %v1734_v33 }
 0x153   : > { %v1557_v55 = vpop.f32.mrf.mxu3 }
 0x154   : > { %v1766_v58 = vxor.u32 2147516416, %v3188_v40  ;;  %v1596_v59 = vadd.f32 %v1557_v55, %v1370_v48 }
 0x155   : > { %v1182_v10 = vpop.f32.mrf.mxu1 }
 0x156   : > { %v1782_v61 = vunpack.c.l.bf16 %v1766_v58  ;;  %v1715_v38 = vadd.f32 %v1676_v16, %v1596_v59  ;;  %v1218_v12 = vadd.f32 %v1182_v10, %v3077_v32 }
 0x157   : > { %v1334_v1 = vpop.f32.mrf.mxu2 }
 0x158   : > { %v1798_v39 = vmul.f32 1.442695, %v1782_v61  ;;  %v1735_v57 = vadd.f32 %v3184_v14, %v1715_v38  ;;  %v1371_v3 = vadd.f32 %v1334_v1, %v1217_v62  ;;  %v2748_v62 = vmov 1065369472  }
 0x159   : > { %v1679_v42 = vpop.f32.mrf.mxu0  ;;  %v3207_v1 = vunpack.c.h.bf16 %v2748_v62 }
 0x15a   : > { %2628 = vpow2.f32 %v1798_v39  ;;  %v3193_v5 = vpack.c.bf16 %v1735_v57, %v1735_v57 }
 0x15b   : > { %v1560_v6 = vpop.f32.mrf.mxu3 }
 0x15c   : > { %v1767_v7 = vxor.u32 2147516416, %v3193_v5  ;;  %v1597_v8 = vadd.f32 %v1560_v6, %v1371_v3 }
 0x15d   : > { %v1185_v43 = vpop.f32.mrf.mxu1 }
 0x15e   : > { %v1783_v27 = vunpack.c.l.bf16 %v1767_v7  ;;  %v1716_v11 = vadd.f32 %v1679_v42, %v1597_v8  ;;  %v1219_v34 = vadd.f32 %v1185_v43, %v3088_v53  ;;  %v3209_v42 = vunpack.c.l.bf16 %v2748_v62 }
 0x15f   : > { %v1336_v51 = vpop.f32.mrf.mxu2 }
 0x160   : > { %v2629_v13 = vpop.eup %2628  ;;  %v1800_v54 = vmul.f32 1.442695, %v1783_v27  ;;  %v1736_v17 = vadd.f32 %v3184_v14, %v1716_v11  ;;  %v1372_v18 = vadd.f32 %v1336_v51, %v1218_v12 }
 0x161   : > { %v1830_v47 = vpack.c.bf16 %v2629_v13, %v2629_v13  ;;  %v1681_v22 = vpop.f32.mrf.mxu0 }
 0x162   : > { %2630 = vpow2.f32 %v1800_v54  ;;  %v3198_v56 = vpack.c.bf16 %v1736_v17, %v1736_v17 }
 0x163   : > { %v1846_v0 = vunpack.c.l.bf16 %v1830_v47  ;;  %v1562_v24 = vpop.f32.mrf.mxu3 }
 0x164   : > { %v1768_v29 = vxor.u32 2147516416, %v3198_v56  ;;  %v1598_v20 = vadd.f32 %v1562_v24, %v1372_v18 }
 0x165   : > { %v1862_v30 = vadd.f32 1.0, %v1846_v0  ;;  %v1187_v21 = vpop.f32.mrf.mxu1 }
 0x166   : > { %v1784_v19 = vunpack.c.l.bf16 %v1768_v29  ;;  %v1717_v32 = vadd.f32 %v1681_v22, %v1598_v20  ;;  %v1220_v38 = vadd.f32 %v1187_v21, %v3095_v4 }
 0x167   : > { %v1878_v37 = vpack.c.bf16 %v1862_v30, %v1862_v30  ;;  %v1339_v41 = vpop.f32.mrf.mxu2 }
 0x168   : > { %v2631_v44 = vpop.eup %2630  ;;  %v1802_v46 = vmul.f32 1.442695, %v1784_v19  ;;  %v1737_v49 = vadd.f32 %v3184_v14, %v1717_v32  ;;  %v1373_v9 = vadd.f32 %v1339_v41, %v1219_v34 }
 0x169   : > { %v1896_v50 = vunpack.c.h.bf16 %v1878_v37  ;;  %v1897_v25 = vunpack.c.l.bf16 %v1878_v37  ;;  %v1831_v36 = vpack.c.bf16 %v2631_v44, %v2631_v44  ;;  %v1684_v52 = vpop.f32.mrf.mxu0 }
 0x16a   : > { %2632 = vpow2.f32 %v1802_v46  ;;  %v3203_v33 = vpack.c.bf16 %v1737_v49, %v1737_v49 }
 0x16b   : > { %2634 = vrcp.f32 %v1896_v50  ;;  %v1847_v48 = vunpack.c.l.bf16 %v1831_v36  ;;  %v1565_v16 = vpop.f32.mrf.mxu3 }
 0x16c   : > { %2636 = vrcp.f32 %v1897_v25  ;;  %v1769_v53 = vxor.u32 2147516416, %v3203_v33  ;;  %v1599_v55 = vadd.f32 %v1565_v16, %v1373_v9 }
 0x16d   : > { %v1863_v58 = vadd.f32 1.0, %v1847_v48  ;;  %v1190_v59 = vpop.f32.mrf.mxu1 }
 0x16e   : > { %v1785_v10 = vunpack.c.l.bf16 %v1769_v53  ;;  %v1718_v61 = vadd.f32 %v1684_v52, %v1599_v55  ;;  %v1221_v21 = vadd.f32 %v1190_v59, %v3108_v31 }
 0x16f   : > { %v1879_v39 = vpack.c.bf16 %v1863_v58, %v1863_v58  ;;  %v1341_v57 = vpop.f32.mrf.mxu2 }
 0x170   : > { %v2633_v3 = vpop.eup %2632  ;;  %v1804_v6 = vmul.f32 1.442695, %v1785_v10  ;;  %v1738_v7 = vadd.f32 %v3184_v14, %v1718_v61  ;;  %v1374_v8 = vadd.f32 %v1341_v57, %v1220_v38 }
 0x171   : > { %v2635_v43 = vpop.eup %2634  ;;  %v1903_v27 = vunpack.c.h.bf16 %v1879_v39  ;;  %v1904_v11 = vunpack.c.l.bf16 %v1879_v39  ;;  %v1832_v12 = vpack.c.bf16 %v2633_v3, %v2633_v3  ;;  %v1686_v51 = vpop.f32.mrf.mxu0  ;;  %v2008_v39 = vunpack.c.l.bf16 %v3188_v40 }
 0x172   : > { %v2637_v13 = vpop.eup %2636  ;;  %2638 = vpow2.f32 %v1804_v6  ;;  %v3212_v4 = vpack.c.bf16 %v1738_v7, %v1738_v7  ;;  %v1899_v54 = vmul.f32 %v2635_v43, %v3207_v1  ;;  %v2009_v7 = vunpack.c.l.bf16 %v3193_v5 }
 0x173   : > { %2640 = vrcp.f32 %v1903_v27  ;;  %v1848_v17 = vunpack.c.l.bf16 %v1832_v12  ;;  %v1567_v18 = vpop.f32.mrf.mxu3  ;;  %v1901_v47 = vmul.f32 %v2637_v13, %v3209_v42 }
 0x174   : > { %2642 = vrcp.f32 %v1904_v11  ;;  %v1770_v22 = vxor.u32 2147516416, %v3212_v4  ;;  %v1600_v0 = vadd.f32 %v1567_v18, %v1374_v8 }
 0x175   : > { %v1864_v24 = vadd.f32 1.0, %v1848_v17  ;;  %v1192_v29 = vpop.f32.mrf.mxu1  ;;  %v1902_v37 = vpack.c.bf16 %v1899_v54, %v1901_v47 }
 0x176   : > { %v1786_v20 = vunpack.c.l.bf16 %v1770_v22  ;;  %v1719_v30 = vadd.f32 %v1686_v51, %v1600_v0  ;;  %v1222_v6 = vadd.f32 %v1192_v29, %v3115_v45 }
 0x177   : > { %v1880_v19 = vpack.c.bf16 %v1864_v24, %v1864_v24  ;;  %v1344_v32 = vpop.f32.mrf.mxu2  ;;  %v2024_v58 = vunpack.c.l.bf16 %v1902_v37 }
 0x178   : > { %v2639_v34 = vpop.eup %2638  ;;  %v1806_v41 = vmul.f32 1.442695, %v1786_v20  ;;  %v1739_v44 = vadd.f32 %v3184_v14, %v1719_v30  ;;  %v1375_v46 = vadd.f32 %v1344_v32, %v1221_v21 }
 0x179   : > { %v2641_v49 = vpop.eup %2640  ;;  %v1910_v9 = vunpack.c.h.bf16 %v1880_v19  ;;  %v1911_v50 = vunpack.c.l.bf16 %v1880_v19  ;;  %v1833_v25 = vpack.c.bf16 %v2639_v34, %v2639_v34  ;;  %v1689_v36 = vpop.f32.mrf.mxu0  ;;  %v2040_v12 = vmul.f32 %v2024_v58, %v2008_v39 }
 0x17a   : > { %v2643_v52 = vpop.eup %2642  ;;  %v1906_v48 = vmul.f32 %v2641_v49, %v3207_v1  ;;  %2644 = vpow2.f32 %v1806_v41  ;;  %v3220_v16 = vpack.c.bf16 %v1739_v44, %v1739_v44 }
 0x17b   : > { %v1908_v31 = vmul.f32 %v2643_v52, %v3209_v42  ;;  %2646 = vrcp.f32 %v1910_v9  ;;  %v1849_v53 = vunpack.c.l.bf16 %v1833_v25  ;;  %v1570_v55 = vpop.f32.mrf.mxu3 }
 0x17c   : > { %2648 = vrcp.f32 %v1911_v50  ;;  %v1771_v59 = vxor.u32 2147516416, %v3220_v16  ;;  %v1601_v10 = vadd.f32 %v1570_v55, %v1375_v46 }
 0x17d   : > { %v1909_v61 = vpack.c.bf16 %v1906_v48, %v1908_v31  ;;  %v1865_v38 = vadd.f32 1.0, %v1849_v53  ;;  %v1195_v62 = vpop.f32.mrf.mxu1 }
 0x17e   : > { %v1787_v57 = vunpack.c.l.bf16 %v1771_v59  ;;  %v1720_v3 = vadd.f32 %v1689_v36, %v1601_v10  ;;  %v1223_v46 = vadd.f32 %v1195_v62, %v3129_v60 }
 0x17f   : > { %v2025_v8 = vunpack.c.l.bf16 %v1909_v61  ;;  %v1881_v43 = vpack.c.bf16 %v1865_v38, %v1865_v38  ;;  %v1346_v27 = vpop.f32.mrf.mxu2 }
 0x180   : > { %v2645_v11 = vpop.eup %2644  ;;  %v1808_v51 = vmul.f32 1.442695, %v1787_v57  ;;  %v1740_v13 = vadd.f32 %v3184_v14, %v1720_v3  ;;  %v1376_v54 = vadd.f32 %v1346_v27, %v1222_v6  ;;  %v2010_v27 = vunpack.c.l.bf16 %v3198_v56 }
 0x181   : > { %v2647_v17 = vpop.eup %2646  ;;  %v2041_v18 = vmul.f32 %v2025_v8, %v2009_v7  ;;  %v1917_v47 = vunpack.c.h.bf16 %v1881_v43  ;;  %v1918_v40 = vunpack.c.l.bf16 %v1881_v43  ;;  %v1834_v22 = vpack.c.bf16 %v2645_v11, %v2645_v11  ;;  %v1691_v0 = vpop.f32.mrf.mxu0 }
 0x182   : > { %v2649_v24 = vpop.eup %2648  ;;  %2650 = vpow2.f32 %v1808_v51  ;;  %v3234_v45 = vpack.c.bf16 %v1740_v13, %v1740_v13  ;;  %v1913_v29 = vmul.f32 %v2647_v17, %v3207_v1  ;;  %v2011_v13 = vunpack.c.l.bf16 %v3203_v33 }
 0x183   : > { %v2543_v5 = vpack.c.bf16 %v2041_v18, %v2040_v12  ;;  %2652 = vrcp.f32 %v1917_v47  ;;  %v1850_v20 = vunpack.c.l.bf16 %v1834_v22  ;;  %v1572_v30 = vpop.f32.mrf.mxu3  ;;  %v1915_v21 = vmul.f32 %v2649_v24, %v3209_v42 }
 0x184   : > { %2654 = vrcp.f32 %v1918_v40  ;;  %v1772_v19 = vxor.u32 2147516416, %v3234_v45  ;;  %v1602_v32 = vadd.f32 %v1572_v30, %v1376_v54 }
 0x185   : > { %2544 = vst [vmem:[%s3232_s27] sm:$0xff] %v2543_v5   ;;  %v1866_v34 = vadd.f32 1.0, %v1850_v20  ;;  %v1197_v37 = vpop.f32.mrf.mxu1  ;;  %v1916_v25 = vpack.c.bf16 %v1913_v29, %v1915_v21 }
 0x186   : > { %v1788_v41 = vunpack.c.l.bf16 %v1772_v19  ;;  %v1721_v44 = vadd.f32 %v1691_v0, %v1602_v32  ;;  %v1224_v51 = vadd.f32 %v1197_v37, %v3136_v23 }
 0x187   : > { %v1882_v49 = vpack.c.bf16 %v1866_v34, %v1866_v34  ;;  %v1349_v9 = vpop.f32.mrf.mxu2  ;;  %v2026_v57 = vunpack.c.l.bf16 %v1916_v25 }
 0x188   : > { %v2651_v50 = vpop.eup %2650  ;;  %v1810_v36 = vmul.f32 1.442695, %v1788_v41  ;;  %v1741_v52 = vadd.f32 %v3184_v14, %v1721_v44  ;;  %v1377_v48 = vadd.f32 %v1349_v9, %v1223_v46 }
 0x189   : > { %v2653_v31 = vpop.eup %2652  ;;  %v1924_v53 = vunpack.c.h.bf16 %v1882_v49  ;;  %v1925_v55 = vunpack.c.l.bf16 %v1882_v49  ;;  %v1835_v58 = vpack.c.bf16 %v2651_v50, %v2651_v50  ;;  %v1694_v59 = vpop.f32.mrf.mxu0  ;;  %v2042_v40 = vmul.f32 %v2026_v57, %v2010_v27 }
 0x18a   : > { %v2655_v10 = vpop.eup %2654  ;;  %v1920_v61 = vmul.f32 %v2653_v31, %v3207_v1  ;;  %2656 = vpow2.f32 %v1810_v36  ;;  %v3243_v38 = vpack.c.bf16 %v1741_v52, %v1741_v52 }
 0x18b   : > { %v1922_v60 = vmul.f32 %v2655_v10, %v3209_v42  ;;  %2658 = vrcp.f32 %v1924_v53  ;;  %v1851_v62 = vunpack.c.l.bf16 %v1835_v58  ;;  %v1575_v39 = vpop.f32.mrf.mxu3 }
 0x18c   : > { %2660 = vrcp.f32 %v1925_v55  ;;  %v1773_v3 = vxor.u32 2147516416, %v3243_v38  ;;  %v1603_v6 = vadd.f32 %v1575_v39, %v1377_v48 }
 0x18d   : > { %v1923_v7 = vpack.c.bf16 %v1920_v61, %v1922_v60  ;;  %v1867_v8 = vadd.f32 1.0, %v1851_v62  ;;  %v1200_v43 = vpop.f32.mrf.mxu1 }
 0x18e   : > { %v1789_v11 = vunpack.c.l.bf16 %v1773_v3  ;;  %v1722_v12 = vadd.f32 %v1694_v59, %v1603_v6  ;;  %v1225_v36 = vadd.f32 %v1200_v43, %v3148_v28 }
 0x18f   : > { %v2027_v54 = vunpack.c.l.bf16 %v1923_v7  ;;  %v1883_v17 = vpack.c.bf16 %v1867_v8, %v1867_v8  ;;  %v1351_v18 = vpop.f32.mrf.mxu2 }
 0x190   : > { %v2657_v47 = vpop.eup %2656  ;;  %v1812_v22 = vmul.f32 1.442695, %v1789_v11  ;;  %v1742_v0 = vadd.f32 %v3184_v14, %v1722_v12  ;;  %v1378_v24 = vadd.f32 %v1351_v18, %v1224_v51 }
 0x191   : > { %v2659_v5 = vpop.eup %2658  ;;  %v2043_v29 = vmul.f32 %v2027_v54, %v2011_v13  ;;  %v1931_v20 = vunpack.c.h.bf16 %v1883_v17  ;;  %v1932_v56 = vunpack.c.l.bf16 %v1883_v17  ;;  %v1836_v30 = vpack.c.bf16 %v2657_v47, %v2657_v47  ;;  %v1696_v21 = vpop.f32.mrf.mxu0 }
 0x192   : > { %v2661_v19 = vpop.eup %2660  ;;  %2662 = vpow2.f32 %v1812_v22  ;;  %v3251_v23 = vpack.c.bf16 %v1742_v0, %v1742_v0  ;;  %v1927_v32 = vmul.f32 %v2659_v5, %v3207_v1  ;;  %v2012_v54 = vunpack.c.l.bf16 %v3212_v4 }
 0x193   : > { %v2548_v33 = vpack.c.bf16 %v2043_v29, %v2042_v40  ;;  %2664 = vrcp.f32 %v1931_v20  ;;  %v1852_v34 = vunpack.c.l.bf16 %v1836_v30  ;;  %v1577_v37 = vpop.f32.mrf.mxu3  ;;  %v1929_v41 = vmul.f32 %v2661_v19, %v3209_v42 }
 0x194   : > { %2666 = vrcp.f32 %v1932_v56  ;;  %v1774_v44 = vxor.u32 2147516416, %v3251_v23  ;;  %v1604_v46 = vadd.f32 %v1577_v37, %v1378_v24  ;;  %v2013_v40 = vunpack.c.l.bf16 %v3220_v16 }
 0x195   : > { %2592 = vst [vmem:[%s3232_s27 + $0x8] sm:$0xff] %v2548_v33   ;;  %v1868_v49 = vadd.f32 1.0, %v1852_v34  ;;  %v1202_v9 = vpop.f32.mrf.mxu1  ;;  %v1930_v53 = vpack.c.bf16 %v1927_v32, %v1929_v41 }
 0x196   : > { %v1790_v50 = vunpack.c.l.bf16 %v1774_v44  ;;  %v1723_v25 = vadd.f32 %v1696_v21, %v1604_v46  ;;  %v1226_v47 = vadd.f32 %v1202_v9, %v3155_v63 }
 0x197   : > { %v1884_v52 = vpack.c.bf16 %v1868_v49, %v1868_v49  ;;  %v1354_v48 = vpop.f32.mrf.mxu2  ;;  %v2028_v43 = vunpack.c.l.bf16 %v1930_v53 }
 0x198   : > { %v2663_v31 = vpop.eup %2662  ;;  %v1814_v55 = vmul.f32 1.442695, %v1790_v50  ;;  %v1743_v58 = vadd.f32 %v3184_v14, %v1723_v25  ;;  %v1379_v59 = vadd.f32 %v1354_v48, %v1225_v36 }
 0x199   : > { %v2665_v10 = vpop.eup %2664  ;;  %v1938_v61 = vunpack.c.h.bf16 %v1884_v52  ;;  %v1939_v60 = vunpack.c.l.bf16 %v1884_v52  ;;  %v1837_v62 = vpack.c.bf16 %v2663_v31, %v2663_v31  ;;  %v1699_v39 = vpop.f32.mrf.mxu0  ;;  %v2044_v29 = vmul.f32 %v2028_v43, %v2012_v54 }
 0x19a   : > { %v2667_v57 = vpop.eup %2666  ;;  %v1934_v3 = vmul.f32 %v2665_v10, %v3207_v1  ;;  %2668 = vpow2.f32 %v1814_v55  ;;  %v3260_v6 = vpack.c.bf16 %v1743_v58, %v1743_v58 }
 0x19b   : > { %v1936_v28 = vmul.f32 %v2667_v57, %v3209_v42  ;;  %2670 = vrcp.f32 %v1938_v61  ;;  %v1853_v7 = vunpack.c.l.bf16 %v1837_v62  ;;  %v1580_v8 = vpop.f32.mrf.mxu3 }
 0x19c   : > { %2672 = vrcp.f32 %v1939_v60  ;;  %v1775_v27 = vxor.u32 2147516416, %v3260_v6  ;;  %v1605_v11 = vadd.f32 %v1580_v8, %v1379_v59 }
 0x19d   : > { %v1937_v12 = vpack.c.bf16 %v1934_v3, %v1936_v28  ;;  %v1869_v51 = vadd.f32 1.0, %v1853_v7  ;;  %v1205_v13 = vpop.f32.mrf.mxu1 }
 0x19e   : > { %v1791_v17 = vunpack.c.l.bf16 %v1775_v27  ;;  %v1724_v18 = vadd.f32 %v1699_v39, %v1605_v11  ;;  %v1227_v48 = vadd.f32 %v1205_v13, %v3164_v2 }
 0x19f   : > { %v2029_v22 = vunpack.c.l.bf16 %v1937_v12  ;;  %v1885_v0 = vpack.c.bf16 %v1869_v51, %v1869_v51  ;;  %v1356_v24 = vpop.f32.mrf.mxu2 }
 0x1a0   : > { %v2669_v5 = vpop.eup %2668  ;;  %v1816_v20 = vmul.f32 1.442695, %v1791_v17  ;;  %v1744_v56 = vadd.f32 %v3184_v14, %v1724_v18  ;;  %v1380_v30 = vadd.f32 %v1356_v24, %v1226_v47  ;;  %v2014_v18 = vunpack.c.l.bf16 %v3234_v45 }
 0x1a1   : > { %v2671_v21 = vpop.eup %2670  ;;  %v2045_v19 = vmul.f32 %v2029_v22, %v2013_v40  ;;  %v1945_v33 = vunpack.c.h.bf16 %v1885_v0  ;;  %v1946_v4 = vunpack.c.l.bf16 %v1885_v0  ;;  %v1838_v32 = vpack.c.bf16 %v2669_v5, %v2669_v5  ;;  %v1701_v34 = vpop.f32.mrf.mxu0 }
 0x1a2   : > { %v2673_v37 = vpop.eup %2672  ;;  %2674 = vpow2.f32 %v1816_v20  ;;  %v3268_v63 = vpack.c.bf16 %v1744_v56, %v1744_v56  ;;  %v1941_v41 = vmul.f32 %v2671_v21, %v3207_v1  ;;  %v2015_v0 = vunpack.c.l.bf16 %v3243_v38 }
 0x1a3   : > { %v2553_v16 = vpack.c.bf16 %v2045_v19, %v2044_v29  ;;  %2676 = vrcp.f32 %v1945_v33  ;;  %v1854_v44 = vunpack.c.l.bf16 %v1838_v32  ;;  %v1582_v46 = vpop.f32.mrf.mxu3  ;;  %v1943_v49 = vmul.f32 %v2673_v37, %v3209_v42 }
 0x1a4   : > { %2678 = vrcp.f32 %v1946_v4  ;;  %v1776_v9 = vxor.u32 2147516416, %v3268_v63  ;;  %v1606_v50 = vadd.f32 %v1582_v46, %v1380_v30 }
 0x1a5   : > { %2593 = vst [vmem:[%s3232_s27 + $0x10] sm:$0xff] %v2553_v16   ;;  %v1870_v25 = vadd.f32 1.0, %v1854_v44  ;;  %v1207_v31 = vpop.f32.mrf.mxu1  ;;  %v1944_v59 = vpack.c.bf16 %v1941_v41, %v1943_v49 }
 0x1a6   : > { %v1792_v36 = vunpack.c.l.bf16 %v1776_v9  ;;  %v1725_v52 = vadd.f32 %v1701_v34, %v1606_v50  ;;  %v1228_v22 = vadd.f32 %v1207_v31, %v3170_v15 }
 0x1a7   : > { %v1886_v53 = vpack.c.bf16 %v1870_v25, %v1870_v25  ;;  %v1359_v55 = vpop.f32.mrf.mxu2  ;;  %v2030_v12 = vunpack.c.l.bf16 %v1944_v59 }
 0x1a8   : > { %v2675_v58 = vpop.eup %2674  ;;  %v1818_v10 = vmul.f32 1.442695, %v1792_v36  ;;  %v1745_v61 = vadd.f32 %v3184_v14, %v1725_v52  ;;  %v1381_v60 = vadd.f32 %v1359_v55, %v1227_v48 }
 0x1a9   : > { %v2677_v62 = vpop.eup %2676  ;;  %v1952_v39 = vunpack.c.h.bf16 %v1886_v53  ;;  %v1953_v57 = vunpack.c.l.bf16 %v1886_v53  ;;  %v1839_v3 = vpack.c.bf16 %v2675_v58, %v2675_v58  ;;  %v1704_v28 = vpop.f32.mrf.mxu0  ;;  %v2046_v56 = vmul.f32 %v2030_v12, %v2014_v18 }
 0x1aa   : > { %v2679_v7 = vpop.eup %2678  ;;  %v1948_v8 = vmul.f32 %v2677_v62, %v3207_v1  ;;  %2680 = vpow2.f32 %v1818_v10  ;;  %v3277_v43 = vpack.c.bf16 %v1745_v61, %v1745_v61 }
 0x1ab   : > { %v1950_v2 = vmul.f32 %v2679_v7, %v3209_v42  ;;  %2682 = vrcp.f32 %v1952_v39  ;;  %v1855_v27 = vunpack.c.l.bf16 %v1839_v3  ;;  %v1585_v11 = vpop.f32.mrf.mxu3 }
 0x1ac   : > { %2684 = vrcp.f32 %v1953_v57  ;;  %v1777_v51 = vxor.u32 2147516416, %v3277_v43  ;;  %v1607_v13 = vadd.f32 %v1585_v11, %v1381_v60 }
 0x1ad   : > { %v1951_v54 = vpack.c.bf16 %v1948_v8, %v1950_v2  ;;  %v1871_v17 = vadd.f32 1.0, %v1855_v27  ;;  %v1210_v33 = vpop.f32.mrf.mxu1 }
 0x1ae   : > { %v1793_v47 = vunpack.c.l.bf16 %v1777_v51  ;;  %v1726_v40 = vadd.f32 %v1704_v28, %v1607_v13  ;;  %v1229_v31 = vadd.f32 %v1210_v33, %v3176_v26 }
 0x1af   : > { %v2031_v24 = vunpack.c.l.bf16 %v1951_v54  ;;  %v1887_v5 = vpack.c.bf16 %v1871_v17, %v1871_v17  ;;  %v1361_v29 = vpop.f32.mrf.mxu2 }
 0x1b0   : > { %v2681_v20 = vpop.eup %2680  ;;  %v1820_v30 = vmul.f32 1.442695, %v1793_v47  ;;  %v1746_v21 = vadd.f32 %v3184_v14, %v1726_v40  ;;  %v1382_v19 = vadd.f32 %v1361_v29, %v1228_v22  ;;  %v2016_v47 = vunpack.c.l.bf16 %v3251_v23 }
 0x1b1   : > { %v2683_v4 = vpop.eup %2682  ;;  %v2047_v32 = vmul.f32 %v2031_v24, %v2015_v0  ;;  %v1959_v34 = vunpack.c.h.bf16 %v1887_v5  ;;  %v1960_v45 = vunpack.c.l.bf16 %v1887_v5  ;;  %v1840_v37 = vpack.c.bf16 %v2681_v20, %v2681_v20  ;;  %v1706_v16 = vpop.f32.mrf.mxu0 }
 0x1b2   : > { %v2685_v15 = vpop.eup %2684  ;;  %2686 = vpow2.f32 %v1820_v30  ;;  %v3285_v38 = vpack.c.bf16 %v1746_v21, %v1746_v21  ;;  %v1955_v44 = vmul.f32 %v2683_v4, %v3207_v1  ;;  %v2017_v24 = vunpack.c.l.bf16 %v3260_v6 }
 0x1b3   : > { %v2558_v41 = vpack.c.bf16 %v2047_v32, %v2046_v56  ;;  %2688 = vrcp.f32 %v1959_v34  ;;  %v1856_v46 = vunpack.c.l.bf16 %v1840_v37  ;;  %v1587_v49 = vpop.f32.mrf.mxu3  ;;  %v1957_v9 = vmul.f32 %v2685_v15, %v3209_v42 }
 0x1b4   : > { %2690 = vrcp.f32 %v1960_v45  ;;  %v1778_v50 = vxor.u32 2147516416, %v3285_v38  ;;  %v1608_v25 = vadd.f32 %v1587_v49, %v1382_v19 }
 0x1b5   : > { %2594 = vst [vmem:[%s3232_s27 + $0x18] sm:$0xff] %v2558_v41   ;;  %v1872_v36 = vadd.f32 1.0, %v1856_v46  ;;  %v1958_v59 = vpack.c.bf16 %v1955_v44, %v1957_v9  ;;  %v1212_v2 = vpop.f32.mrf.mxu1 }
 0x1b6   : > { %v1794_v52 = vunpack.c.l.bf16 %v1778_v50  ;;  %v1727_v48 = vadd.f32 %v1706_v16, %v1608_v25  ;;  %v1230_v0 = vadd.f32 %v1212_v2, %v3179_v35 }
 0x1b7   : > { %v1888_v53 = vpack.c.bf16 %v1872_v36, %v1872_v36  ;;  %v1364_v55 = vpop.f32.mrf.mxu2  ;;  %v2032_v51 = vunpack.c.l.bf16 %v1958_v59 }
 0x1b8   : > { %v2687_v58 = vpop.eup %2686  ;;  %v1822_v10 = vmul.f32 1.442695, %v1794_v52  ;;  %v1747_v61 = vadd.f32 %v3184_v14, %v1727_v48  ;;  %v1383_v60 = vadd.f32 %v1364_v55, %v1229_v31 }
 0x1b9   : > { %v2689_v62 = vpop.eup %2688  ;;  %v1966_v39 = vunpack.c.h.bf16 %v1888_v53  ;;  %v1967_v57 = vunpack.c.l.bf16 %v1888_v53  ;;  %v1841_v3 = vpack.c.bf16 %v2687_v58, %v2687_v58  ;;  %v1709_v11 = vpop.f32.mrf.mxu0  ;;  %v2048_v30 = vmul.f32 %v2032_v51, %v2016_v47 }
 0x1ba   : > { %v2691_v28 = vpop.eup %2690  ;;  %v1962_v7 = vmul.f32 %v2689_v62, %v3207_v1  ;;  %2692 = vpow2.f32 %v1822_v10  ;;  %v3294_v8 = vpack.c.bf16 %v1747_v61, %v1747_v61 }
 0x1bb   : > { %v1964_v26 = vmul.f32 %v2691_v28, %v3209_v42  ;;  %2694 = vrcp.f32 %v1966_v39  ;;  %v1857_v27 = vunpack.c.l.bf16 %v1841_v3  ;;  %v1590_v12 = vpop.f32.mrf.mxu3 }
 0x1bc   : > { %2696 = vrcp.f32 %v1967_v57  ;;  %v1779_v13 = vxor.u32 2147516416, %v3294_v8  ;;  %v1609_v54 = vadd.f32 %v1590_v12, %v1383_v60 }
 0x1bd   : > { %v1965_v17 = vpack.c.bf16 %v1962_v7, %v1964_v26  ;;  %v1873_v18 = vadd.f32 1.0, %v1857_v27  ;;  %v2018_v26 = vunpack.c.l.bf16 %v3268_v63 }
 0x1be   : > { %v1795_v40 = vunpack.c.l.bf16 %v1779_v13  ;;  %v1728_v22 = vadd.f32 %v1709_v11, %v1609_v54  ;;  %v2019_v11 = vunpack.c.l.bf16 %v3277_v43 }
 0x1bf   : > { %v2033_v5 = vunpack.c.l.bf16 %v1965_v17  ;;  %v1889_v29 = vpack.c.bf16 %v1873_v18, %v1873_v18  ;;  %v1366_v20 = vpop.f32.mrf.mxu2 }
 0x1c0   : > { %v2693_v56 = vpop.eup %2692  ;;  %v1824_v21 = vmul.f32 1.442695, %v1795_v40  ;;  %v1748_v19 = vadd.f32 %v3184_v14, %v1728_v22  ;;  %v1384_v33 = vadd.f32 %v1366_v20, %v1230_v0 }
 0x1c1   : > { %v2695_v4 = vpop.eup %2694  ;;  %v2049_v32 = vmul.f32 %v2033_v5, %v2017_v24  ;;  %v1973_v34 = vunpack.c.h.bf16 %v1889_v29  ;;  %v1974_v23 = vunpack.c.l.bf16 %v1889_v29  ;;  %v1842_v45 = vpack.c.bf16 %v2693_v56, %v2693_v56  ;;  %v1711_v50 = vpop.f32.mrf.mxu0 }
 0x1c2   : > { %v2697_v37 = vpop.eup %2696  ;;  %2698 = vpow2.f32 %v1824_v21  ;;  %v3302_v35 = vpack.c.bf16 %v1748_v19, %v1748_v19  ;;  %v1969_v16 = vmul.f32 %v2695_v4, %v3207_v1 }
 0x1c3   : > { %v2563_v6 = vpack.c.bf16 %v2049_v32, %v2048_v30  ;;  %2700 = vrcp.f32 %v1973_v34  ;;  %v1858_v15 = vunpack.c.l.bf16 %v1842_v45  ;;  %v1592_v41 = vpop.f32.mrf.mxu3  ;;  %v1971_v44 = vmul.f32 %v2697_v37, %v3209_v42 }
 0x1c4   : > { %2702 = vrcp.f32 %v1974_v23  ;;  %v1780_v46 = vxor.u32 2147516416, %v3302_v35  ;;  %v1610_v49 = vadd.f32 %v1592_v41, %v1384_v33  ;;  %v2020_v41 = vunpack.c.l.bf16 %v3285_v38 }
 0x1c5   : > { %2595 = vst [vmem:[%s3232_s27 + $0x20] sm:$0xff] %v2563_v6   ;;  %v1874_v9 = vadd.f32 1.0, %v1858_v15  ;;  %v1972_v31 = vpack.c.bf16 %v1969_v16, %v1971_v44  ;;  %v2021_v44 = vunpack.c.l.bf16 %v3294_v8 }
 0x1c6   : > { %v1796_v25 = vunpack.c.l.bf16 %v1780_v46  ;;  %v1729_v36 = vadd.f32 %v1711_v50, %v1610_v49 }
 0x1c7   : > { %v1890_v52 = vpack.c.bf16 %v1874_v9, %v1874_v9  ;;  %v2034_v28 = vunpack.c.l.bf16 %v1972_v31 }
 0x1c8   : > { %v2699_v48 = vpop.eup %2698  ;;  %v1826_v53 = vmul.f32 1.442695, %v1796_v25  ;;  %v1749_v55 = vadd.f32 %v3184_v14, %v1729_v36 }
 0x1c9   : > { %v2701_v58 = vpop.eup %2700  ;;  %v1980_v59 = vunpack.c.h.bf16 %v1890_v52  ;;  %v1981_v10 = vunpack.c.l.bf16 %v1890_v52  ;;  %v1843_v61 = vpack.c.bf16 %v2699_v48, %v2699_v48  ;;  %v2050_v54 = vmul.f32 %v2034_v28, %v2018_v26 }
 0x1ca   : > { %v2703_v60 = vpop.eup %2702  ;;  %v1976_v62 = vmul.f32 %v2701_v58, %v3207_v1  ;;  %2704 = vpow2.f32 %v1826_v53  ;;  %v3310_v39 = vpack.c.bf16 %v1749_v55, %v1749_v55 }
 0x1cb   : > { %v1978_v57 = vmul.f32 %v2703_v60, %v3209_v42  ;;  %2706 = vrcp.f32 %v1980_v59  ;;  %v1859_v3 = vunpack.c.l.bf16 %v1843_v61 }
 0x1cc   : > { %2708 = vrcp.f32 %v1981_v10  ;;  %v1781_v7 = vxor.u32 2147516416, %v3310_v39 }
 0x1cd   : > { %v1979_v2 = vpack.c.bf16 %v1976_v62, %v1978_v57  ;;  %v1875_v14 = vadd.f32 1.0, %v1859_v3  ;;  %v2022_v62 = vunpack.c.l.bf16 %v3302_v35  ;;  %v2023_v57 = vunpack.c.l.bf16 %v3310_v39 }
 0x1ce   : > { %v1797_v27 = vunpack.c.l.bf16 %v1781_v7 }
 0x1cf   : > { %v2035_v12 = vunpack.c.l.bf16 %v1979_v2  ;;  %v1891_v51 = vpack.c.bf16 %v1875_v14, %v1875_v14 }
 0x1d0   : > { %v2705_v13 = vpop.eup %2704  ;;  %v1828_v17 = vmul.f32 1.442695, %v1797_v27 }
 0x1d1   : > { %v2707_v18 = vpop.eup %2706  ;;  %v2051_v47 = vmul.f32 %v2035_v12, %v2019_v11  ;;  %v1987_v40 = vunpack.c.h.bf16 %v1891_v51  ;;  %v1988_v22 = vunpack.c.l.bf16 %v1891_v51  ;;  %v1844_v0 = vpack.c.bf16 %v2705_v13, %v2705_v13 }
 0x1d2   : > { %v2709_v24 = vpop.eup %2708  ;;  %2710 = vpow2.f32 %v1828_v17  ;;  %v1983_v63 = vmul.f32 %v2707_v18, %v3207_v1 }
 0x1d3   : > { %v2568_v5 = vpack.c.bf16 %v2051_v47, %v2050_v54  ;;  %2712 = vrcp.f32 %v1987_v40  ;;  %v1860_v29 = vunpack.c.l.bf16 %v1844_v0  ;;  %v1985_v43 = vmul.f32 %v2709_v24, %v3209_v42 }
 0x1d4   : > { %2714 = vrcp.f32 %v1988_v22 }
 0x1d5   : > { %2596 = vst [vmem:[%s3232_s27 + $0x28] sm:$0xff] %v2568_v5   ;;  %v1876_v20 = vadd.f32 1.0, %v1860_v29  ;;  %v1986_v19 = vpack.c.bf16 %v1983_v63, %v1985_v43 }
 0x1d7   : > { %v1892_v56 = vpack.c.bf16 %v1876_v20, %v1876_v20  ;;  %v2036_v6 = vunpack.c.l.bf16 %v1986_v19 }
 0x1d8   : > { %v2711_v30 = vpop.eup %2710 }
 0x1d9   : > { %v2713_v21 = vpop.eup %2712  ;;  %v1994_v33 = vunpack.c.h.bf16 %v1892_v56  ;;  %v1995_v4 = vunpack.c.l.bf16 %v1892_v56  ;;  %v1845_v32 = vpack.c.bf16 %v2711_v30, %v2711_v30  ;;  %v2052_v50 = vmul.f32 %v2036_v6, %v2020_v41 }
 0x1da   : > { %v2715_v34 = vpop.eup %2714  ;;  %v1990_v23 = vmul.f32 %v2713_v21, %v3207_v1 }
 0x1db   : > { %v1992_v45 = vmul.f32 %v2715_v34, %v3209_v42  ;;  %2716 = vrcp.f32 %v1994_v33  ;;  %v1861_v37 = vunpack.c.l.bf16 %v1845_v32 }
 0x1dc   : > { %2718 = vrcp.f32 %v1995_v4 }
 0x1dd   : > { %v1993_v16 = vpack.c.bf16 %v1990_v23, %v1992_v45  ;;  %v1877_v15 = vadd.f32 1.0, %v1861_v37 }
 0x1df   : > { %v2037_v46 = vunpack.c.l.bf16 %v1993_v16  ;;  %v1893_v49 = vpack.c.bf16 %v1877_v15, %v1877_v15 }
 0x1e1   : > { %v2717_v9 = vpop.eup %2716  ;;  %v2053_v25 = vmul.f32 %v2037_v46, %v2021_v44  ;;  %v2001_v36 = vunpack.c.h.bf16 %v1893_v49  ;;  %v2002_v52 = vunpack.c.l.bf16 %v1893_v49 }
 0x1e2   : > { %v2719_v48 = vpop.eup %2718  ;;  %v1997_v53 = vmul.f32 %v2717_v9, %v3207_v1 }
 0x1e3   : > { %v2573_v31 = vpack.c.bf16 %v2053_v25, %v2052_v50  ;;  %2720 = vrcp.f32 %v2001_v36  ;;  %v1999_v55 = vmul.f32 %v2719_v48, %v3209_v42 }
 0x1e4   : > { %2722 = vrcp.f32 %v2002_v52 }
 0x1e5   : > { %2597 = vst [vmem:[%s3232_s27 + $0x30] sm:$0xff] %v2573_v31   ;;  %v2000_v58 = vpack.c.bf16 %v1997_v53, %v1999_v55 }
 0x1e7   : > { %v2038_v61 = vunpack.c.l.bf16 %v2000_v58 }
 0x1e9   : > { %v2721_v38 = vpop.eup %2720  ;;  %v2054_v28 = vmul.f32 %v2038_v61, %v2022_v62 }
 0x1ea   : > { %v2723_v8 = vpop.eup %2722  ;;  %v2004_v59 = vmul.f32 %v2721_v38, %v3207_v1 }
 0x1eb   : > { %v2006_v10 = vmul.f32 %v2723_v8, %v3209_v42 }
 0x1ed   : > { %v2007_v60 = vpack.c.bf16 %v2004_v59, %v2006_v10 }
 0x1ef   : > { %v2039_v3 = vunpack.c.l.bf16 %v2007_v60 }
 0x1f1   : > { %v2055_v7 = vmul.f32 %v2039_v3, %v2023_v57 }
 0x1f3   : > { %v2578_v2 = vpack.c.bf16 %v2055_v7, %v2054_v28 }
 0x1f5   : > { %2598 = vst [vmem:[%s3232_s27 + $0x38] sm:$0xff] %v2578_v2  }
 0x1f6 PF: > { %s14_s17 = sadd.s32 1, %s2746_s17   ;;  %s3345_s15 = smov %s2742_s16 }
 0x1f7   : > { %p11_p5 = scmp.ge.s32.totalorder %s14_s17, 4   ;;  %s3346_s16 = smov %s3348_s18 }
 0x1f9   :  { %13 = sbr.rel (!%p11_p5) target bundleno = 2 (0x2), region = 77 }

</bundles_post_ra>
